<compile_context>
chip_gen: v7x
topology: tpu7x:2x2x1
jax: 0.10.0
libtpu: 0.0.40
codegen_flags: <defaults>
</compile_context>

<pallas_src>
import math
import functools

import jax
import jax.numpy as jnp
from jax import lax
from jax.experimental import pallas as pl
from jax.experimental.pallas import tpu as pltpu


# ------------------------------ helpers --------------------------------------
def _layernorm(x, gamma, beta, eps):
    """torch.nn.LayerNorm over the last dim (population variance), f32."""
    mu = jnp.mean(x, axis=-1, keepdims=True)
    c = x - mu
    var = jnp.mean(c * c, axis=-1, keepdims=True)
    return c * lax.rsqrt(var + eps) * gamma + beta


# ------------------------ fused whole-encoder kernel --------------------------
def _make_encoder_kernel(*, num_heads, head_dim, eps, compute_dtype,
                         want_hidden, want_probs):
    D = num_heads * head_dim

    def kernel(x_ref, mask_ref, wqkv_ref, bqkv_ref, wo_ref, bo_ref,
               ln1g_ref, ln1b_ref, wi_ref, bi_ref, wd_ref, bd_ref,
               ln2g_ref, ln2b_ref, *rest):
        # rest = [y_ref, (hs_ref), (probs_ref), h_carry_ref]
        i = 0
        y_ref = rest[i]; i += 1
        hs_ref = rest[i] if want_hidden else None
        i += int(want_hidden)
        probs_ref = rest[i] if want_probs else None
        i += int(want_probs)
        h_ref = rest[i]                       # (T, D) f32 carry across layers

        l = pl.program_id(1)

        # Layer input: original tokens at l == 0, carried hidden state after.
        @pl.when(l == 0)
        def _():
            h_ref[...] = x_ref[0]

        x = h_ref[...]                        # (T, D) f32
        m = mask_ref[0, 0]                    # (1, T) f32 additive key mask
        xc = x.astype(compute_dtype)

        # Fused QKV projection: one (T, D) @ (D, 3D) MXU matmul, f32 accum.
        # 1/sqrt(head_dim) is pre-folded into the Q columns/bias.
        qkv = jnp.dot(xc, wqkv_ref[0],
                      preferred_element_type=jnp.float32) + bqkv_ref[0]
        qkvc = qkv.astype(compute_dtype)      # single cast of the whole slab

        ctx_heads = []
        for h in range(num_heads):
            lo = h * head_dim
            q = qkvc[:, lo:lo + head_dim]                     # (T, Dh) bf16
            k = qkvc[:, D + lo:D + lo + head_dim]             # (T, Dh) bf16
            v = qkvc[:, 2 * D + lo:2 * D + lo + head_dim]     # (T, Dh) bf16

            # scores = Q_scaled @ K^T + mask ; K consumed untransposed.
            scores = lax.dot_general(q, k, (((1,), (1,)), ((), ())),
                                     preferred_element_type=jnp.float32) + m

            # Softmax in f32; reciprocal on the EUP slot.
            smax = jnp.max(scores, axis=-1, keepdims=True)
            e = jnp.exp(scores - smax)
            denom = jnp.sum(e, axis=-1, keepdims=True)
            p = e * pl.reciprocal(denom, approx=True)

            if probs_ref is not None:
                probs_ref[0, 0, h] = p.astype(probs_ref.dtype)

            # TODO(synk): attention dropout is identity (eval mode); training
            # dropout would need pltpu.prng_seed + pltpu.prng_random_bits.
            ctx_heads.append(jnp.dot(p.astype(compute_dtype), v,
                                     preferred_element_type=jnp.float32))

        # Head merge in registers (no masked partial stores, no f32 scratch).
        ctx = jnp.concatenate(ctx_heads, axis=-1).astype(compute_dtype)

        # BertSelfDRN: output dense + residual + LayerNorm.
        attn_dense = jnp.dot(ctx, wo_ref[0],
                             preferred_element_type=jnp.float32) + bo_ref[0]
        h1 = _layernorm(attn_dense + x, ln1g_ref[0], ln1b_ref[0], eps)

        # BertActivation + BertDRN: GELU FFN + residual + LayerNorm.
        # TODO(synk): tanh-approximate GELU (HF 'gelu' is exact-erf).
        inter = jax.nn.gelu(
            jnp.dot(h1.astype(compute_dtype), wi_ref[0],
                    preferred_element_type=jnp.float32) + bi_ref[0],
            approximate=True)
        ffn = jnp.dot(inter.astype(compute_dtype), wd_ref[0],
                      preferred_element_type=jnp.float32) + bd_ref[0]
        y = _layernorm(ffn + h1, ln2g_ref[0], ln2b_ref[0], eps)

        h_ref[...] = y                        # carry to the next layer
        if hs_ref is not None:
            hs_ref[0, 0] = y.astype(hs_ref.dtype)

        @pl.when(l == pl.num_programs(1) - 1)
        def _():
            y_ref[0] = y.astype(y_ref.dtype)

    return kernel


# --------------------------- parameter preparation ----------------------------
def prepare_layer_params(raw, num_heads, compute_dtype=jnp.bfloat16):
    """Pre-transpose (torch (out,in) -> (in,out)), fuse QKV and fold the
    1/sqrt(head_dim) attention scale into the Q weight/bias. Done ONCE."""
    D = raw["wq"].shape[0]
    head_dim = D // num_heads
    scale = 1.0 / math.sqrt(head_dim)
    w_qkv = jnp.concatenate(
        [raw["wq"].T * scale, raw["wk"].T, raw["wv"].T], axis=1)       # (D, 3D)
    b_qkv = jnp.concatenate([raw["bq"] * scale, raw["bk"], raw["bv"]], axis=0)
    return {
        "w_qkv": w_qkv.astype(compute_dtype),
        "b_qkv": b_qkv.reshape(1, 3 * D).astype(jnp.float32),
        "w_o": raw["wo"].T.astype(compute_dtype),                      # (D, D)
        "b_o": raw["bo"].reshape(1, D).astype(jnp.float32),
        "ln1_g": raw["ln1_g"].reshape(1, D).astype(jnp.float32),
        "ln1_b": raw["ln1_b"].reshape(1, D).astype(jnp.float32),
        "w_i": raw["wi"].T.astype(compute_dtype),                      # (D, DI)
        "b_i": raw["bi"].reshape(1, -1).astype(jnp.float32),
        "w_d": raw["wd"].T.astype(compute_dtype),                      # (DI, D)
        "b_d": raw["bd"].reshape(1, D).astype(jnp.float32),
        "ln2_g": raw["ln2_g"].reshape(1, D).astype(jnp.float32),
        "ln2_b": raw["ln2_b"].reshape(1, D).astype(jnp.float32),
    }


def stack_layer_params(per_layer):
    """Stack prepared per-layer params along a leading L axis (grid axis)."""
    return {k: jnp.stack([p[k] for p in per_layer], axis=0)
            for k in per_layer[0]}


# ----------------------------- encoder forward --------------------------------
def bert_encoder_forward(stacked, query_tokens, self_mask, *, num_heads, eps,
                         output_attentions=False, output_hidden_states=False,
                         compute_dtype=jnp.bfloat16,
                         vmem_limit_bytes=48 * 1024 * 1024):
    """Equivalent to BertEncoder.forward with add_cross_attention=False
    (ms_context_tokens / cross_mask unused in that config), dropout in eval
    mode.  One pallas_call covers every layer.

    TODO(synk): cross-attention layers (config.add_cross_attention=True) and
    relative_key(_query) position embeddings are not implemented."""
    B, T, D = query_tokens.shape
    L = stacked["w_qkv"].shape[0]
    DI = stacked["w_i"].shape[-1]
    head_dim = D // num_heads

    xmap = lambda b, l: (b, 0, 0)
    mmap = lambda b, l: (b, 0, 0, 0)
    wmap = lambda b, l: (l, 0, 0)      # layer-indexed => pipeline prefetches l+1

    in_specs = [
        pl.BlockSpec((1, T, D), xmap),                 # query tokens
        pl.BlockSpec((1, 1, 1, T), mmap),              # additive key-padding mask
        pl.BlockSpec((1, D, 3 * D), wmap),             # fused QKV weight (scaled Q)
        pl.BlockSpec((1, 1, 3 * D), wmap),             # fused QKV bias
        pl.BlockSpec((1, D, D), wmap),                 # attn output dense weight
        pl.BlockSpec((1, 1, D), wmap),                 # attn output dense bias
        pl.BlockSpec((1, 1, D), wmap),                 # LayerNorm1 gamma
        pl.BlockSpec((1, 1, D), wmap),                 # LayerNorm1 beta
        pl.BlockSpec((1, D, DI), wmap),                # intermediate dense weight
        pl.BlockSpec((1, 1, DI), wmap),                # intermediate dense bias
        pl.BlockSpec((1, DI, D), wmap),                # FFN output dense weight
        pl.BlockSpec((1, 1, D), wmap),                 # FFN output dense bias
        pl.BlockSpec((1, 1, D), wmap),                 # LayerNorm2 gamma
        pl.BlockSpec((1, 1, D), wmap),                 # LayerNorm2 beta
    ]
    operands = (query_tokens, self_mask,
                stacked["w_qkv"], stacked["b_qkv"],
                stacked["w_o"], stacked["b_o"],
                stacked["ln1_g"], stacked["ln1_b"],
                stacked["w_i"], stacked["b_i"],
                stacked["w_d"], stacked["b_d"],
                stacked["ln2_g"], stacked["ln2_b"])

    out_shape = [jax.ShapeDtypeStruct((B, T, D), query_tokens.dtype)]
    out_specs = [pl.BlockSpec((1, T, D), xmap)]
    if output_hidden_states:
        out_shape.append(jax.ShapeDtypeStruct((B, L, T, D), query_tokens.dtype))
        out_specs.append(pl.BlockSpec((1, 1, T, D), lambda b, l: (b, l, 0, 0)))
    if output_attentions:
        out_shape.append(
            jax.ShapeDtypeStruct((B, L, num_heads, T, T), compute_dtype))
        out_specs.append(pl.BlockSpec((1, 1, num_heads, T, T),
                                      lambda b, l: (b, l, 0, 0, 0)))

    kernel = _make_encoder_kernel(
        num_heads=num_heads, head_dim=head_dim, eps=eps,
        compute_dtype=compute_dtype,
        want_hidden=output_hidden_states, want_probs=output_attentions)

    outs = pl.pallas_call(
        kernel,
        out_shape=tuple(out_shape),
        grid=(B, L),
        in_specs=in_specs,
        out_specs=tuple(out_specs),
        scratch_shapes=[pltpu.VMEM((T, D), jnp.float32)],   # hidden-state carry
        compiler_params=pltpu.CompilerParams(
            dimension_semantics=("parallel", "arbitrary"),
            # 48 MiB fits every generation (v7x physical = 64 MiB); re-derive
            # per generation once production-shape tiling is in place.
            vmem_limit_bytes=vmem_limit_bytes),
    )(*operands)

    if not isinstance(outs, (tuple, list)):
        outs = (outs,)
    i = 0
    last_hidden = outs[i]; i += 1
    hidden_states = None
    attentions = None
    if output_hidden_states:
        hs = outs[i]; i += 1
        hidden_states = (query_tokens,) + tuple(hs[:, j] for j in range(L))
    if output_attentions:
        probs = outs[i]; i += 1
        attentions = tuple(probs[:, j] for j in range(L))
    return {
        "last_hidden_state": last_hidden,
        "hidden_states": hidden_states,
        "attentions": attentions,
        "cross_attentions": None,
    }


# -------------------------------- reference -----------------------------------
def reference_encoder(raw_layers, x, mask, num_heads, eps, compute_dtype):
    """Pure-JAX reference mirroring the kernel's bf16-operand / f32-accumulate
    matmul strategy (BertLayer semantics, eval-mode dropout)."""
    B, T, D = x.shape
    Dh = D // num_heads
    cd = compute_dtype
    scale = 1.0 / math.sqrt(Dh)

    def layernorm(v, g, b):
        mu = jnp.mean(v, axis=-1, keepdims=True)
        c = v - mu
        var = jnp.mean(c * c, axis=-1, keepdims=True)
        return c * lax.rsqrt(var + eps) * g + b

    def dense(v, w, b):
        return jnp.einsum("btd,de->bte", v.astype(cd), w.T.astype(cd),
                          preferred_element_type=jnp.float32) + b

    attn_maps = []
    hidden = x
    for p in raw_layers:
        q = dense(hidden, p["wq"], p["bq"])
        k = dense(hidden, p["wk"], p["bk"])
        v = dense(hidden, p["wv"], p["bv"])
        heads = lambda z: z.reshape(B, T, num_heads, Dh).transpose(0, 2, 1, 3)
        qh, kh, vh = heads(q), heads(k), heads(v)
        scores = jnp.einsum("bhqd,bhkd->bhqk",
                            (qh * scale).astype(cd), kh.astype(cd),
                            preferred_element_type=jnp.float32) + mask
        probs = jax.nn.softmax(scores, axis=-1)
        attn_maps.append(probs)
        ctx = jnp.einsum("bhqk,bhkd->bhqd", probs.astype(cd), vh.astype(cd),
                         preferred_element_type=jnp.float32)
        ctx = ctx.transpose(0, 2, 1, 3).reshape(B, T, D)
        attn_out = dense(ctx, p["wo"], p["bo"])
        h1 = layernorm(attn_out + hidden, p["ln1_g"], p["ln1_b"])
        inter = jax.nn.gelu(dense(h1, p["wi"], p["bi"]), approximate=True)
        ffn = dense(inter, p["wd"], p["bd"])
        hidden = layernorm(ffn + h1, p["ln2_g"], p["ln2_b"])
    return hidden, attn_maps


# ---------------------------------- main ---------------------------------------
def _make_raw_layer(key, D, DI):
    ks = jax.random.split(key, 16)
    n = lambda k, shape, s: jax.random.normal(k, shape, dtype=jnp.float32) * s
    return {
        "wq": n(ks[0], (D, D), 0.05), "bq": n(ks[1], (D,), 0.01),
        "wk": n(ks[2], (D, D), 0.05), "bk": n(ks[3], (D,), 0.01),
        "wv": n(ks[4], (D, D), 0.05), "bv": n(ks[5], (D,), 0.01),
        "wo": n(ks[6], (D, D), 0.05), "bo": n(ks[7], (D,), 0.01),
        "ln1_g": 1.0 + n(ks[8], (D,), 0.1), "ln1_b": n(ks[9], (D,), 0.01),
        "wi": n(ks[10], (DI, D), 0.05), "bi": n(ks[11], (DI,), 0.01),
        "wd": n(ks[12], (D, DI), 0.05), "bd": n(ks[13], (D,), 0.01),
        "ln2_g": 1.0 + n(ks[14], (D,), 0.1), "ln2_b": n(ks[15], (D,), 0.01),
    }


if __name__ == "__main__":
    # Config: query_size=32, num_attention_heads=4 (head_dim=8),
    # intermediate_size=128, num_hidden_layers=2, batch=2, tokens=8.
    B, T, D, H = 2, 8, 32, 4
    DI = 128
    NUM_LAYERS = 2
    EPS = 1e-12
    COMPUTE_DTYPE = jnp.bfloat16     # MXU operand dtype (f32 accumulation)

    key = jax.random.PRNGKey(0)
    k_x, *layer_keys = jax.random.split(key, NUM_LAYERS + 1)

    query_tokens = jax.random.normal(k_x, (B, T, D), dtype=jnp.float32)
    # Additive self-attention mask in key-padding form (B, 1, 1, T):
    # mask the last 2 key positions.
    self_mask = jnp.zeros((B, 1, 1, T), dtype=jnp.float32)
    self_mask = self_mask.at[:, :, :, T - 2:].set(-10000.0)

    raw_layers = [_make_raw_layer(k, D, DI) for k in layer_keys]
    prepared = [prepare_layer_params(r, H, COMPUTE_DTYPE) for r in raw_layers]
    stacked = stack_layer_params(prepared)

    encoder = jax.jit(functools.partial(
        bert_encoder_forward, num_heads=H, eps=EPS,
        output_attentions=True, output_hidden_states=False,
        compute_dtype=COMPUTE_DTYPE))
    out = encoder(stacked, query_tokens, self_mask)
    jax.block_until_ready(out)

    ref_hidden, ref_attn = reference_encoder(
        raw_layers, query_tokens, self_mask, H, EPS, COMPUTE_DTYPE)

    # Tolerance covers bf16 MXU operands, bf16 probs output and the
    # approximate softmax reciprocal, accumulated over 2 layers.
    assert jnp.allclose(out["last_hidden_state"], ref_hidden,
                        atol=2e-2, rtol=2e-2)
    for a, r in zip(out["attentions"], ref_attn):
        assert jnp.allclose(a.astype(jnp.float32), r, atol=2e-2, rtol=2e-2)

    print("KERNEL_OK")
</pallas_src>

<mosaic_0001>
module attributes {stable_mosaic.version = 11 : i64} {
  func.func @kernel(%arg0: i32, %arg1: i32, %arg2: memref<1x8x32xf32, #tpu.memory_space<vmem>>, %arg3: memref<1x1x1x8xf32, #tpu.memory_space<vmem>>, %arg4: memref<1x32x96xbf16, #tpu.memory_space<vmem>>, %arg5: memref<1x1x96xf32, #tpu.memory_space<vmem>>, %arg6: memref<1x32x32xbf16, #tpu.memory_space<vmem>>, %arg7: memref<1x1x32xf32, #tpu.memory_space<vmem>>, %arg8: memref<1x1x32xf32, #tpu.memory_space<vmem>>, %arg9: memref<1x1x32xf32, #tpu.memory_space<vmem>>, %arg10: memref<1x32x128xbf16, #tpu.memory_space<vmem>>, %arg11: memref<1x1x128xf32, #tpu.memory_space<vmem>>, %arg12: memref<1x128x32xbf16, #tpu.memory_space<vmem>>, %arg13: memref<1x1x32xf32, #tpu.memory_space<vmem>>, %arg14: memref<1x1x32xf32, #tpu.memory_space<vmem>>, %arg15: memref<1x1x32xf32, #tpu.memory_space<vmem>>, %arg16: memref<1x8x32xf32, #tpu.memory_space<vmem>>, %arg17: memref<1x1x4x8x8xbf16, #tpu.memory_space<vmem>>, %arg18: memref<8x32xf32, #tpu.memory_space<vmem>>) attributes {dimension_semantics = [#tpu.dimension_semantics<parallel>, #tpu.dimension_semantics<arbitrary>], iteration_bounds = array<i64: 2, 2>, scalar_prefetch = 0 : i64, scratch_operands = 1 : i64, tpu.core_type = #tpu.core_type<tc>, window_params = [{transform_indices = @transform_0, window_bounds = array<i64: 1, 8, 32>}, {transform_indices = @transform_1, window_bounds = array<i64: 1, 1, 1, 8>}, {transform_indices = @transform_2, window_bounds = array<i64: 1, 32, 96>}, {transform_indices = @transform_3, window_bounds = array<i64: 1, 1, 96>}, {transform_indices = @transform_4, window_bounds = array<i64: 1, 32, 32>}, {transform_indices = @transform_5, window_bounds = array<i64: 1, 1, 32>}, {transform_indices = @transform_6, window_bounds = array<i64: 1, 1, 32>}, {transform_indices = @transform_7, window_bounds = array<i64: 1, 1, 32>}, {transform_indices = @transform_8, window_bounds = array<i64: 1, 32, 128>}, {transform_indices = @transform_9, window_bounds = array<i64: 1, 1, 128>}, {transform_indices = @transform_10, window_bounds = array<i64: 1, 128, 32>}, {transform_indices = @transform_11, window_bounds = array<i64: 1, 1, 32>}, {transform_indices = @transform_12, window_bounds = array<i64: 1, 1, 32>}, {transform_indices = @transform_13, window_bounds = array<i64: 1, 1, 32>}, {transform_indices = @transform_14, window_bounds = array<i64: 1, 8, 32>}, {transform_indices = @transform_15, window_bounds = array<i64: 1, 1, 4, 8, 8>}]} {
    %c0_i32 = arith.constant 0 : i32
    %0 = arith.cmpi eq, %arg1, %c0_i32 : i32
    %1 = arith.extui %0 : i1 to i32
    %c0_i32_0 = arith.constant 0 : i32
    %2 = arith.cmpi ne, %1, %c0_i32_0 : i32
    scf.if %2 {
      %c0_95 = arith.constant 0 : index
      %c0_96 = arith.constant 0 : index
      %c0_97 = arith.constant 0 : index
      %195 = vector.load %arg2[%c0_95, %c0_96, %c0_97] : memref<1x8x32xf32, #tpu.memory_space<vmem>>, vector<1x8x32xf32>
      %196 = vector.shape_cast %195 : vector<1x8x32xf32> to vector<8x32xf32>
      %c0_98 = arith.constant 0 : index
      %c0_99 = arith.constant 0 : index
      %197 = vector.load %arg18[%c0_98, %c0_99] : memref<8x32xf32, #tpu.memory_space<vmem>>, vector<8x32xf32>
      tpu.vector_store %arg18[%c0_98, %c0_99], %196 {strides = array<i32>} : memref<8x32xf32, #tpu.memory_space<vmem>>, vector<8x32xf32>,
    } else {
    }
    %c0 = arith.constant 0 : index
    %c0_1 = arith.constant 0 : index
    %3 = vector.load %arg18[%c0, %c0_1] : memref<8x32xf32, #tpu.memory_space<vmem>>, vector<8x32xf32>
    %c0_2 = arith.constant 0 : index
    %c0_3 = arith.constant 0 : index
    %c0_4 = arith.constant 0 : index
    %c0_5 = arith.constant 0 : index
    %4 = vector.load %arg3[%c0_2, %c0_3, %c0_4, %c0_5] : memref<1x1x1x8xf32, #tpu.memory_space<vmem>>, vector<1x1x1x8xf32>
    %5 = vector.shape_cast %4 : vector<1x1x1x8xf32> to vector<1x8xf32>
    %6 = arith.truncf %3 : vector<8x32xf32> to vector<8x32xbf16>
    %c0_6 = arith.constant 0 : index
    %c0_7 = arith.constant 0 : index
    %c0_8 = arith.constant 0 : index
    %7 = vector.load %arg4[%c0_6, %c0_7, %c0_8] : memref<1x32x96xbf16, #tpu.memory_space<vmem>>, vector<1x32x96xbf16>
    %8 = vector.shape_cast %7 : vector<1x32x96xbf16> to vector<32x96xbf16>
    %cst = arith.constant dense<0.000000e+00> : vector<8x96xf32>
    %9 = tpu.matmul %6, %8, %cst {dimension_numbers = #tpu.dot_dimension_numbers<[1], [0], [0], [1], [0, 0, 1, 1], [], []>} : vector<8x32xbf16>, vector<32x96xbf16>, vector<8x96xf32> -> vector<8x96xf32>
    %c0_9 = arith.constant 0 : index
    %c0_10 = arith.constant 0 : index
    %c0_11 = arith.constant 0 : index
    %10 = vector.load %arg5[%c0_9, %c0_10, %c0_11] : memref<1x1x96xf32, #tpu.memory_space<vmem>>, vector<1x1x96xf32>
    %11 = vector.shape_cast %10 : vector<1x1x96xf32> to vector<1x96xf32>
    %12 = vector.broadcast %11 : vector<1x96xf32> to vector<8x96xf32>
    %13 = arith.addf %9, %12 : vector<8x96xf32>
    %14 = arith.truncf %13 : vector<8x96xf32> to vector<8x96xbf16>
    %15 = vector.extract_strided_slice %14 {offsets = [0, 0], sizes = [8, 8], strides = [1, 1]} : vector<8x96xbf16> to vector<8x8xbf16>
    %16 = vector.extract_strided_slice %14 {offsets = [0, 32], sizes = [8, 8], strides = [1, 1]} : vector<8x96xbf16> to vector<8x8xbf16>
    %17 = vector.extract_strided_slice %14 {offsets = [0, 64], sizes = [8, 8], strides = [1, 1]} : vector<8x96xbf16> to vector<8x8xbf16>
    %cst_12 = arith.constant dense<0.000000e+00> : vector<8x8xf32>
    %18 = tpu.matmul %15, %16, %cst_12 {dimension_numbers = #tpu.dot_dimension_numbers<[1], [1], [0], [0], [0, 0, 1, 0], [], []>} : vector<8x8xbf16>, vector<8x8xbf16>, vector<8x8xf32> -> vector<8x8xf32>
    %19 = vector.broadcast %5 : vector<1x8xf32> to vector<8x8xf32>
    %20 = arith.addf %18, %19 : vector<8x8xf32>
    %cst_13 = arith.constant dense<0xFF800000> : vector<8xf32>
    %21 = vector.multi_reduction <maximumf>, %20, %cst_13 [1] : vector<8x8xf32> to vector<8xf32>
    %22 = vector.shape_cast %21 : vector<8xf32> to vector<8x1xf32>
    %23 = vector.broadcast %22 : vector<8x1xf32> to vector<8x8xf32>
    %24 = arith.subf %20, %23 : vector<8x8xf32>
    %25 = math.exp %24 : vector<8x8xf32>
    %cst_14 = arith.constant dense<0.000000e+00> : vector<8xf32>
    %26 = vector.multi_reduction <add>, %25, %cst_14 [1] : vector<8x8xf32> to vector<8xf32>
    %27 = vector.shape_cast %26 : vector<8xf32> to vector<8x1xf32>
    %28 = tpu.reciprocal %27 {approx = true} : vector<8x1xf32> -> vector<8x1xf32>
    %29 = vector.broadcast %28 : vector<8x1xf32> to vector<8x8xf32>
    %30 = arith.mulf %25, %29 : vector<8x8xf32>
    %31 = arith.truncf %30 : vector<8x8xf32> to vector<8x8xbf16>
    %c0_15 = arith.constant 0 : index
    %c0_16 = arith.constant 0 : index
    %c0_17 = arith.constant 0 : index
    %c0_18 = arith.constant 0 : index
    %c0_19 = arith.constant 0 : index
    %32 = vector.load %arg17[%c0_15, %c0_16, %c0_17, %c0_18, %c0_19] : memref<1x1x4x8x8xbf16, #tpu.memory_space<vmem>>, vector<1x1x1x8x8xbf16>
    %33 = vector.shape_cast %32 : vector<1x1x1x8x8xbf16> to vector<8x8xbf16>
    %34 = vector.shape_cast %31 : vector<8x8xbf16> to vector<1x1x1x8x8xbf16>
    tpu.vector_store %arg17[%c0_15, %c0_16, %c0_17, %c0_18, %c0_19], %34 {strides = array<i32>} : memref<1x1x4x8x8xbf16, #tpu.memory_space<vmem>>, vector<1x1x1x8x8xbf16>,
    %35 = arith.truncf %30 : vector<8x8xf32> to vector<8x8xbf16>
    %cst_20 = arith.constant dense<0.000000e+00> : vector<8x8xf32>
    %36 = tpu.matmul %35, %17, %cst_20 {dimension_numbers = #tpu.dot_dimension_numbers<[1], [0], [0], [1], [0, 0, 1, 1], [], []>} : vector<8x8xbf16>, vector<8x8xbf16>, vector<8x8xf32> -> vector<8x8xf32>
    %37 = vector.extract_strided_slice %14 {offsets = [0, 8], sizes = [8, 8], strides = [1, 1]} : vector<8x96xbf16> to vector<8x8xbf16>
    %38 = vector.extract_strided_slice %14 {offsets = [0, 40], sizes = [8, 8], strides = [1, 1]} : vector<8x96xbf16> to vector<8x8xbf16>
    %39 = vector.extract_strided_slice %14 {offsets = [0, 72], sizes = [8, 8], strides = [1, 1]} : vector<8x96xbf16> to vector<8x8xbf16>
    %cst_21 = arith.constant dense<0.000000e+00> : vector<8x8xf32>
    %40 = tpu.matmul %37, %38, %cst_21 {dimension_numbers = #tpu.dot_dimension_numbers<[1], [1], [0], [0], [0, 0, 1, 0], [], []>} : vector<8x8xbf16>, vector<8x8xbf16>, vector<8x8xf32> -> vector<8x8xf32>
    %41 = vector.broadcast %5 : vector<1x8xf32> to vector<8x8xf32>
    %42 = arith.addf %40, %41 : vector<8x8xf32>
    %cst_22 = arith.constant dense<0xFF800000> : vector<8xf32>
    %43 = vector.multi_reduction <maximumf>, %42, %cst_22 [1] : vector<8x8xf32> to vector<8xf32>
    %44 = vector.shape_cast %43 : vector<8xf32> to vector<8x1xf32>
    %45 = vector.broadcast %44 : vector<8x1xf32> to vector<8x8xf32>
    %46 = arith.subf %42, %45 : vector<8x8xf32>
    %47 = math.exp %46 : vector<8x8xf32>
    %cst_23 = arith.constant dense<0.000000e+00> : vector<8xf32>
    %48 = vector.multi_reduction <add>, %47, %cst_23 [1] : vector<8x8xf32> to vector<8xf32>
    %49 = vector.shape_cast %48 : vector<8xf32> to vector<8x1xf32>
    %50 = tpu.reciprocal %49 {approx = true} : vector<8x1xf32> -> vector<8x1xf32>
    %51 = vector.broadcast %50 : vector<8x1xf32> to vector<8x8xf32>
    %52 = arith.mulf %47, %51 : vector<8x8xf32>
    %53 = arith.truncf %52 : vector<8x8xf32> to vector<8x8xbf16>
    %c0_24 = arith.constant 0 : index
    %c0_25 = arith.constant 0 : index
    %c1 = arith.constant 1 : index
    %c0_26 = arith.constant 0 : index
    %c0_27 = arith.constant 0 : index
    %54 = vector.load %arg17[%c0_24, %c0_25, %c1, %c0_26, %c0_27] : memref<1x1x4x8x8xbf16, #tpu.memory_space<vmem>>, vector<1x1x1x8x8xbf16>
    %55 = vector.shape_cast %54 : vector<1x1x1x8x8xbf16> to vector<8x8xbf16>
    %56 = vector.shape_cast %53 : vector<8x8xbf16> to vector<1x1x1x8x8xbf16>
    tpu.vector_store %arg17[%c0_24, %c0_25, %c1, %c0_26, %c0_27], %56 {strides = array<i32>} : memref<1x1x4x8x8xbf16, #tpu.memory_space<vmem>>, vector<1x1x1x8x8xbf16>,
    %57 = arith.truncf %52 : vector<8x8xf32> to vector<8x8xbf16>
    %cst_28 = arith.constant dense<0.000000e+00> : vector<8x8xf32>
    %58 = tpu.matmul %57, %39, %cst_28 {dimension_numbers = #tpu.dot_dimension_numbers<[1], [0], [0], [1], [0, 0, 1, 1], [], []>} : vector<8x8xbf16>, vector<8x8xbf16>, vector<8x8xf32> -> vector<8x8xf32>
    %59 = vector.extract_strided_slice %14 {offsets = [0, 16], sizes = [8, 8], strides = [1, 1]} : vector<8x96xbf16> to vector<8x8xbf16>
    %60 = vector.extract_strided_slice %14 {offsets = [0, 48], sizes = [8, 8], strides = [1, 1]} : vector<8x96xbf16> to vector<8x8xbf16>
    %61 = vector.extract_strided_slice %14 {offsets = [0, 80], sizes = [8, 8], strides = [1, 1]} : vector<8x96xbf16> to vector<8x8xbf16>
    %cst_29 = arith.constant dense<0.000000e+00> : vector<8x8xf32>
    %62 = tpu.matmul %59, %60, %cst_29 {dimension_numbers = #tpu.dot_dimension_numbers<[1], [1], [0], [0], [0, 0, 1, 0], [], []>} : vector<8x8xbf16>, vector<8x8xbf16>, vector<8x8xf32> -> vector<8x8xf32>
    %63 = vector.broadcast %5 : vector<1x8xf32> to vector<8x8xf32>
    %64 = arith.addf %62, %63 : vector<8x8xf32>
    %cst_30 = arith.constant dense<0xFF800000> : vector<8xf32>
    %65 = vector.multi_reduction <maximumf>, %64, %cst_30 [1] : vector<8x8xf32> to vector<8xf32>
    %66 = vector.shape_cast %65 : vector<8xf32> to vector<8x1xf32>
    %67 = vector.broadcast %66 : vector<8x1xf32> to vector<8x8xf32>
    %68 = arith.subf %64, %67 : vector<8x8xf32>
    %69 = math.exp %68 : vector<8x8xf32>
    %cst_31 = arith.constant dense<0.000000e+00> : vector<8xf32>
    %70 = vector.multi_reduction <add>, %69, %cst_31 [1] : vector<8x8xf32> to vector<8xf32>
    %71 = vector.shape_cast %70 : vector<8xf32> to vector<8x1xf32>
    %72 = tpu.reciprocal %71 {approx = true} : vector<8x1xf32> -> vector<8x1xf32>
    %73 = vector.broadcast %72 : vector<8x1xf32> to vector<8x8xf32>
    %74 = arith.mulf %69, %73 : vector<8x8xf32>
    %75 = arith.truncf %74 : vector<8x8xf32> to vector<8x8xbf16>
    %c0_32 = arith.constant 0 : index
    %c0_33 = arith.constant 0 : index
    %c2 = arith.constant 2 : index
    %c0_34 = arith.constant 0 : index
    %c0_35 = arith.constant 0 : index
    %76 = vector.load %arg17[%c0_32, %c0_33, %c2, %c0_34, %c0_35] : memref<1x1x4x8x8xbf16, #tpu.memory_space<vmem>>, vector<1x1x1x8x8xbf16>
    %77 = vector.shape_cast %76 : vector<1x1x1x8x8xbf16> to vector<8x8xbf16>
    %78 = vector.shape_cast %75 : vector<8x8xbf16> to vector<1x1x1x8x8xbf16>
    tpu.vector_store %arg17[%c0_32, %c0_33, %c2, %c0_34, %c0_35], %78 {strides = array<i32>} : memref<1x1x4x8x8xbf16, #tpu.memory_space<vmem>>, vector<1x1x1x8x8xbf16>,
    %79 = arith.truncf %74 : vector<8x8xf32> to vector<8x8xbf16>
    %cst_36 = arith.constant dense<0.000000e+00> : vector<8x8xf32>
    %80 = tpu.matmul %79, %61, %cst_36 {dimension_numbers = #tpu.dot_dimension_numbers<[1], [0], [0], [1], [0, 0, 1, 1], [], []>} : vector<8x8xbf16>, vector<8x8xbf16>, vector<8x8xf32> -> vector<8x8xf32>
    %81 = vector.extract_strided_slice %14 {offsets = [0, 24], sizes = [8, 8], strides = [1, 1]} : vector<8x96xbf16> to vector<8x8xbf16>
    %82 = vector.extract_strided_slice %14 {offsets = [0, 56], sizes = [8, 8], strides = [1, 1]} : vector<8x96xbf16> to vector<8x8xbf16>
    %83 = vector.extract_strided_slice %14 {offsets = [0, 88], sizes = [8, 8], strides = [1, 1]} : vector<8x96xbf16> to vector<8x8xbf16>
    %cst_37 = arith.constant dense<0.000000e+00> : vector<8x8xf32>
    %84 = tpu.matmul %81, %82, %cst_37 {dimension_numbers = #tpu.dot_dimension_numbers<[1], [1], [0], [0], [0, 0, 1, 0], [], []>} : vector<8x8xbf16>, vector<8x8xbf16>, vector<8x8xf32> -> vector<8x8xf32>
    %85 = vector.broadcast %5 : vector<1x8xf32> to vector<8x8xf32>
    %86 = arith.addf %84, %85 : vector<8x8xf32>
    %cst_38 = arith.constant dense<0xFF800000> : vector<8xf32>
    %87 = vector.multi_reduction <maximumf>, %86, %cst_38 [1] : vector<8x8xf32> to vector<8xf32>
    %88 = vector.shape_cast %87 : vector<8xf32> to vector<8x1xf32>
    %89 = vector.broadcast %88 : vector<8x1xf32> to vector<8x8xf32>
    %90 = arith.subf %86, %89 : vector<8x8xf32>
    %91 = math.exp %90 : vector<8x8xf32>
    %cst_39 = arith.constant dense<0.000000e+00> : vector<8xf32>
    %92 = vector.multi_reduction <add>, %91, %cst_39 [1] : vector<8x8xf32> to vector<8xf32>
    %93 = vector.shape_cast %92 : vector<8xf32> to vector<8x1xf32>
    %94 = tpu.reciprocal %93 {approx = true} : vector<8x1xf32> -> vector<8x1xf32>
    %95 = vector.broadcast %94 : vector<8x1xf32> to vector<8x8xf32>
    %96 = arith.mulf %91, %95 : vector<8x8xf32>
    %97 = arith.truncf %96 : vector<8x8xf32> to vector<8x8xbf16>
    %c0_40 = arith.constant 0 : index
    %c0_41 = arith.constant 0 : index
    %c3 = arith.constant 3 : index
    %c0_42 = arith.constant 0 : index
    %c0_43 = arith.constant 0 : index
    %98 = vector.load %arg17[%c0_40, %c0_41, %c3, %c0_42, %c0_43] : memref<1x1x4x8x8xbf16, #tpu.memory_space<vmem>>, vector<1x1x1x8x8xbf16>
    %99 = vector.shape_cast %98 : vector<1x1x1x8x8xbf16> to vector<8x8xbf16>
    %100 = vector.shape_cast %97 : vector<8x8xbf16> to vector<1x1x1x8x8xbf16>
    tpu.vector_store %arg17[%c0_40, %c0_41, %c3, %c0_42, %c0_43], %100 {strides = array<i32>} : memref<1x1x4x8x8xbf16, #tpu.memory_space<vmem>>, vector<1x1x1x8x8xbf16>,
    %101 = arith.truncf %96 : vector<8x8xf32> to vector<8x8xbf16>
    %cst_44 = arith.constant dense<0.000000e+00> : vector<8x8xf32>
    %102 = tpu.matmul %101, %83, %cst_44 {dimension_numbers = #tpu.dot_dimension_numbers<[1], [0], [0], [1], [0, 0, 1, 1], [], []>} : vector<8x8xbf16>, vector<8x8xbf16>, vector<8x8xf32> -> vector<8x8xf32>
    %103 = tpu.concatenate %36, %58, %80, %102 in 1 : vector<8x8xf32>, vector<8x8xf32>, vector<8x8xf32>, vector<8x8xf32> -> vector<8x32xf32>
    %104 = arith.truncf %103 : vector<8x32xf32> to vector<8x32xbf16>
    %c0_45 = arith.constant 0 : index
    %c0_46 = arith.constant 0 : index
    %c0_47 = arith.constant 0 : index
    %105 = vector.load %arg6[%c0_45, %c0_46, %c0_47] : memref<1x32x32xbf16, #tpu.memory_space<vmem>>, vector<1x32x32xbf16>
    %106 = vector.shape_cast %105 : vector<1x32x32xbf16> to vector<32x32xbf16>
    %cst_48 = arith.constant dense<0.000000e+00> : vector<8x32xf32>
    %107 = tpu.matmul %104, %106, %cst_48 {dimension_numbers = #tpu.dot_dimension_numbers<[1], [0], [0], [1], [0, 0, 1, 1], [], []>} : vector<8x32xbf16>, vector<32x32xbf16>, vector<8x32xf32> -> vector<8x32xf32>
    %c0_49 = arith.constant 0 : index
    %c0_50 = arith.constant 0 : index
    %c0_51 = arith.constant 0 : index
    %108 = vector.load %arg7[%c0_49, %c0_50, %c0_51] : memref<1x1x32xf32, #tpu.memory_space<vmem>>, vector<1x1x32xf32>
    %109 = vector.shape_cast %108 : vector<1x1x32xf32> to vector<1x32xf32>
    %110 = vector.broadcast %109 : vector<1x32xf32> to vector<8x32xf32>
    %111 = arith.addf %107, %110 : vector<8x32xf32>
    %112 = arith.addf %111, %3 : vector<8x32xf32>
    %c0_52 = arith.constant 0 : index
    %c0_53 = arith.constant 0 : index
    %c0_54 = arith.constant 0 : index
    %113 = vector.load %arg8[%c0_52, %c0_53, %c0_54] : memref<1x1x32xf32, #tpu.memory_space<vmem>>, vector<1x1x32xf32>
    %114 = vector.shape_cast %113 : vector<1x1x32xf32> to vector<1x32xf32>
    %c0_55 = arith.constant 0 : index
    %c0_56 = arith.constant 0 : index
    %c0_57 = arith.constant 0 : index
    %115 = vector.load %arg9[%c0_55, %c0_56, %c0_57] : memref<1x1x32xf32, #tpu.memory_space<vmem>>, vector<1x1x32xf32>
    %116 = vector.shape_cast %115 : vector<1x1x32xf32> to vector<1x32xf32>
    %cst_58 = arith.constant dense<0.000000e+00> : vector<8xf32>
    %117 = vector.multi_reduction <add>, %112, %cst_58 [1] : vector<8x32xf32> to vector<8xf32>
    %118 = vector.shape_cast %117 : vector<8xf32> to vector<8x1xf32>
    %cst_59 = arith.constant 3.200000e+01 : f32
    %119 = vector.broadcast %cst_59 : f32 to vector<8x1xf32>
    %120 = arith.divf %118, %119 : vector<8x1xf32>
    %121 = vector.broadcast %120 : vector<8x1xf32> to vector<8x32xf32>
    %122 = arith.subf %112, %121 : vector<8x32xf32>
    %123 = arith.mulf %122, %122 : vector<8x32xf32>
    %cst_60 = arith.constant dense<0.000000e+00> : vector<8xf32>
    %124 = vector.multi_reduction <add>, %123, %cst_60 [1] : vector<8x32xf32> to vector<8xf32>
    %125 = vector.shape_cast %124 : vector<8xf32> to vector<8x1xf32>
    %cst_61 = arith.constant 3.200000e+01 : f32
    %126 = vector.broadcast %cst_61 : f32 to vector<8x1xf32>
    %127 = arith.divf %125, %126 : vector<8x1xf32>
    %cst_62 = arith.constant 9.99999996E-13 : f32
    %128 = vector.broadcast %cst_62 : f32 to vector<8x1xf32>
    %129 = arith.addf %127, %128 : vector<8x1xf32>
    %130 = math.rsqrt %129 : vector<8x1xf32>
    %131 = vector.broadcast %130 : vector<8x1xf32> to vector<8x32xf32>
    %132 = arith.mulf %122, %131 : vector<8x32xf32>
    %133 = vector.broadcast %114 : vector<1x32xf32> to vector<8x32xf32>
    %134 = arith.mulf %132, %133 : vector<8x32xf32>
    %135 = vector.broadcast %116 : vector<1x32xf32> to vector<8x32xf32>
    %136 = arith.addf %134, %135 : vector<8x32xf32>
    %137 = arith.truncf %136 : vector<8x32xf32> to vector<8x32xbf16>
    %c0_63 = arith.constant 0 : index
    %c0_64 = arith.constant 0 : index
    %c0_65 = arith.constant 0 : index
    %138 = vector.load %arg10[%c0_63, %c0_64, %c0_65] : memref<1x32x128xbf16, #tpu.memory_space<vmem>>, vector<1x32x128xbf16>
    %139 = vector.shape_cast %138 : vector<1x32x128xbf16> to vector<32x128xbf16>
    %cst_66 = arith.constant dense<0.000000e+00> : vector<8x128xf32>
    %140 = tpu.matmul %137, %139, %cst_66 {dimension_numbers = #tpu.dot_dimension_numbers<[1], [0], [0], [1], [0, 0, 1, 1], [], []>} : vector<8x32xbf16>, vector<32x128xbf16>, vector<8x128xf32> -> vector<8x128xf32>
    %c0_67 = arith.constant 0 : index
    %c0_68 = arith.constant 0 : index
    %c0_69 = arith.constant 0 : index
    %141 = vector.load %arg11[%c0_67, %c0_68, %c0_69] : memref<1x1x128xf32, #tpu.memory_space<vmem>>, vector<1x1x128xf32>
    %142 = vector.shape_cast %141 : vector<1x1x128xf32> to vector<1x128xf32>
    %143 = vector.broadcast %142 : vector<1x128xf32> to vector<8x128xf32>
    %144 = arith.addf %140, %143 : vector<8x128xf32>
    %145 = arith.mulf %144, %144 : vector<8x128xf32>
    %146 = arith.mulf %144, %145 : vector<8x128xf32>
    %cst_70 = arith.constant 4.471500e-02 : f32
    %147 = vector.broadcast %cst_70 : f32 to vector<8x128xf32>
    %148 = arith.mulf %147, %146 : vector<8x128xf32>
    %149 = arith.addf %144, %148 : vector<8x128xf32>
    %cst_71 = arith.constant 0.797884583 : f32
    %150 = vector.broadcast %cst_71 : f32 to vector<8x128xf32>
    %151 = arith.mulf %150, %149 : vector<8x128xf32>
    %152 = math.tanh %151 : vector<8x128xf32>
    %cst_72 = arith.constant 1.000000e+00 : f32
    %153 = vector.broadcast %cst_72 : f32 to vector<8x128xf32>
    %154 = arith.addf %153, %152 : vector<8x128xf32>
    %cst_73 = arith.constant 5.000000e-01 : f32
    %155 = vector.broadcast %cst_73 : f32 to vector<8x128xf32>
    %156 = arith.mulf %155, %154 : vector<8x128xf32>
    %157 = arith.mulf %144, %156 : vector<8x128xf32>
    %158 = arith.truncf %157 : vector<8x128xf32> to vector<8x128xbf16>
    %c0_74 = arith.constant 0 : index
    %c0_75 = arith.constant 0 : index
    %c0_76 = arith.constant 0 : index
    %159 = vector.load %arg12[%c0_74, %c0_75, %c0_76] : memref<1x128x32xbf16, #tpu.memory_space<vmem>>, vector<1x128x32xbf16>
    %160 = vector.shape_cast %159 : vector<1x128x32xbf16> to vector<128x32xbf16>
    %cst_77 = arith.constant dense<0.000000e+00> : vector<8x32xf32>
    %161 = tpu.matmul %158, %160, %cst_77 {dimension_numbers = #tpu.dot_dimension_numbers<[1], [0], [0], [1], [0, 0, 1, 1], [], []>} : vector<8x128xbf16>, vector<128x32xbf16>, vector<8x32xf32> -> vector<8x32xf32>
    %c0_78 = arith.constant 0 : index
    %c0_79 = arith.constant 0 : index
    %c0_80 = arith.constant 0 : index
    %162 = vector.load %arg13[%c0_78, %c0_79, %c0_80] : memref<1x1x32xf32, #tpu.memory_space<vmem>>, vector<1x1x32xf32>
    %163 = vector.shape_cast %162 : vector<1x1x32xf32> to vector<1x32xf32>
    %164 = vector.broadcast %163 : vector<1x32xf32> to vector<8x32xf32>
    %165 = arith.addf %161, %164 : vector<8x32xf32>
    %166 = arith.addf %165, %136 : vector<8x32xf32>
    %c0_81 = arith.constant 0 : index
    %c0_82 = arith.constant 0 : index
    %c0_83 = arith.constant 0 : index
    %167 = vector.load %arg14[%c0_81, %c0_82, %c0_83] : memref<1x1x32xf32, #tpu.memory_space<vmem>>, vector<1x1x32xf32>
    %168 = vector.shape_cast %167 : vector<1x1x32xf32> to vector<1x32xf32>
    %c0_84 = arith.constant 0 : index
    %c0_85 = arith.constant 0 : index
    %c0_86 = arith.constant 0 : index
    %169 = vector.load %arg15[%c0_84, %c0_85, %c0_86] : memref<1x1x32xf32, #tpu.memory_space<vmem>>, vector<1x1x32xf32>
    %170 = vector.shape_cast %169 : vector<1x1x32xf32> to vector<1x32xf32>
    %cst_87 = arith.constant dense<0.000000e+00> : vector<8xf32>
    %171 = vector.multi_reduction <add>, %166, %cst_87 [1] : vector<8x32xf32> to vector<8xf32>
    %172 = vector.shape_cast %171 : vector<8xf32> to vector<8x1xf32>
    %cst_88 = arith.constant 3.200000e+01 : f32
    %173 = vector.broadcast %cst_88 : f32 to vector<8x1xf32>
    %174 = arith.divf %172, %173 : vector<8x1xf32>
    %175 = vector.broadcast %174 : vector<8x1xf32> to vector<8x32xf32>
    %176 = arith.subf %166, %175 : vector<8x32xf32>
    %177 = arith.mulf %176, %176 : vector<8x32xf32>
    %cst_89 = arith.constant dense<0.000000e+00> : vector<8xf32>
    %178 = vector.multi_reduction <add>, %177, %cst_89 [1] : vector<8x32xf32> to vector<8xf32>
    %179 = vector.shape_cast %178 : vector<8xf32> to vector<8x1xf32>
    %cst_90 = arith.constant 3.200000e+01 : f32
    %180 = vector.broadcast %cst_90 : f32 to vector<8x1xf32>
    %181 = arith.divf %179, %180 : vector<8x1xf32>
    %cst_91 = arith.constant 9.99999996E-13 : f32
    %182 = vector.broadcast %cst_91 : f32 to vector<8x1xf32>
    %183 = arith.addf %181, %182 : vector<8x1xf32>
    %184 = math.rsqrt %183 : vector<8x1xf32>
    %185 = vector.broadcast %184 : vector<8x1xf32> to vector<8x32xf32>
    %186 = arith.mulf %176, %185 : vector<8x32xf32>
    %187 = vector.broadcast %168 : vector<1x32xf32> to vector<8x32xf32>
    %188 = arith.mulf %186, %187 : vector<8x32xf32>
    %189 = vector.broadcast %170 : vector<1x32xf32> to vector<8x32xf32>
    %190 = arith.addf %188, %189 : vector<8x32xf32>
    %c0_92 = arith.constant 0 : index
    %c0_93 = arith.constant 0 : index
    %191 = vector.load %arg18[%c0_92, %c0_93] : memref<8x32xf32, #tpu.memory_space<vmem>>, vector<8x32xf32>
    tpu.vector_store %arg18[%c0_92, %c0_93], %190 {strides = array<i32>} : memref<8x32xf32, #tpu.memory_space<vmem>>, vector<8x32xf32>,
    %c1_i32 = arith.constant 1 : i32
    %192 = arith.cmpi eq, %arg1, %c1_i32 : i32
    %193 = arith.extui %192 : i1 to i32
    %c0_i32_94 = arith.constant 0 : i32
    %194 = arith.cmpi ne, %193, %c0_i32_94 : i32
    scf.if %194 {
      %c0_95 = arith.constant 0 : index
      %c0_96 = arith.constant 0 : index
      %c0_97 = arith.constant 0 : index
      %195 = vector.load %arg16[%c0_95, %c0_96, %c0_97] : memref<1x8x32xf32, #tpu.memory_space<vmem>>, vector<1x8x32xf32>
      %196 = vector.shape_cast %195 : vector<1x8x32xf32> to vector<8x32xf32>
      %197 = vector.shape_cast %190 : vector<8x32xf32> to vector<1x8x32xf32>
      tpu.vector_store %arg16[%c0_95, %c0_96, %c0_97], %197 {strides = array<i32>} : memref<1x8x32xf32, #tpu.memory_space<vmem>>, vector<1x8x32xf32>,
    } else {
    }
    return
  }
  func.func @transform_0(%arg0: i32, %arg1: i32) -> (i32, i32, i32) {
    %c0_i32 = arith.constant 0 : i32
    %c0_i32_0 = arith.constant 0 : i32
    %c0_i32_1 = arith.constant 0 : i32
    return %arg0, %c0_i32, %c0_i32_0 : i32, i32, i32
  }
  func.func @transform_1(%arg0: i32, %arg1: i32) -> (i32, i32, i32, i32) {
    %c0_i32 = arith.constant 0 : i32
    %c0_i32_0 = arith.constant 0 : i32
    %c0_i32_1 = arith.constant 0 : i32
    %c0_i32_2 = arith.constant 0 : i32
    return %arg0, %c0_i32, %c0_i32_0, %c0_i32_1 : i32, i32, i32, i32
  }
  func.func @transform_2(%arg0: i32, %arg1: i32) -> (i32, i32, i32) {
    %c0_i32 = arith.constant 0 : i32
    %c0_i32_0 = arith.constant 0 : i32
    %c0_i32_1 = arith.constant 0 : i32
    return %arg1, %c0_i32, %c0_i32_0 : i32, i32, i32
  }
  func.func @transform_3(%arg0: i32, %arg1: i32) -> (i32, i32, i32) {
    %c0_i32 = arith.constant 0 : i32
    %c0_i32_0 = arith.constant 0 : i32
    %c0_i32_1 = arith.constant 0 : i32
    return %arg1, %c0_i32, %c0_i32_0 : i32, i32, i32
  }
  func.func @transform_4(%arg0: i32, %arg1: i32) -> (i32, i32, i32) {
    %c0_i32 = arith.constant 0 : i32
    %c0_i32_0 = arith.constant 0 : i32
    %c0_i32_1 = arith.constant 0 : i32
    return %arg1, %c0_i32, %c0_i32_0 : i32, i32, i32
  }
  func.func @transform_5(%arg0: i32, %arg1: i32) -> (i32, i32, i32) {
    %c0_i32 = arith.constant 0 : i32
    %c0_i32_0 = arith.constant 0 : i32
    %c0_i32_1 = arith.constant 0 : i32
    return %arg1, %c0_i32, %c0_i32_0 : i32, i32, i32
  }
  func.func @transform_6(%arg0: i32, %arg1: i32) -> (i32, i32, i32) {
    %c0_i32 = arith.constant 0 : i32
    %c0_i32_0 = arith.constant 0 : i32
    %c0_i32_1 = arith.constant 0 : i32
    return %arg1, %c0_i32, %c0_i32_0 : i32, i32, i32
  }
  func.func @transform_7(%arg0: i32, %arg1: i32) -> (i32, i32, i32) {
    %c0_i32 = arith.constant 0 : i32
    %c0_i32_0 = arith.constant 0 : i32
    %c0_i32_1 = arith.constant 0 : i32
    return %arg1, %c0_i32, %c0_i32_0 : i32, i32, i32
  }
  func.func @transform_8(%arg0: i32, %arg1: i32) -> (i32, i32, i32) {
    %c0_i32 = arith.constant 0 : i32
    %c0_i32_0 = arith.constant 0 : i32
    %c0_i32_1 = arith.constant 0 : i32
    return %arg1, %c0_i32, %c0_i32_0 : i32, i32, i32
  }
  func.func @transform_9(%arg0: i32, %arg1: i32) -> (i32, i32, i32) {
    %c0_i32 = arith.constant 0 : i32
    %c0_i32_0 = arith.constant 0 : i32
    %c0_i32_1 = arith.constant 0 : i32
    return %arg1, %c0_i32, %c0_i32_0 : i32, i32, i32
  }
  func.func @transform_10(%arg0: i32, %arg1: i32) -> (i32, i32, i32) {
    %c0_i32 = arith.constant 0 : i32
    %c0_i32_0 = arith.constant 0 : i32
    %c0_i32_1 = arith.constant 0 : i32
    return %arg1, %c0_i32, %c0_i32_0 : i32, i32, i32
  }
  func.func @transform_11(%arg0: i32, %arg1: i32) -> (i32, i32, i32) {
    %c0_i32 = arith.constant 0 : i32
    %c0_i32_0 = arith.constant 0 : i32
    %c0_i32_1 = arith.constant 0 : i32
    return %arg1, %c0_i32, %c0_i32_0 : i32, i32, i32
  }
  func.func @transform_12(%arg0: i32, %arg1: i32) -> (i32, i32, i32) {
    %c0_i32 = arith.constant 0 : i32
    %c0_i32_0 = arith.constant 0 : i32
    %c0_i32_1 = arith.constant 0 : i32
    return %arg1, %c0_i32, %c0_i32_0 : i32, i32, i32
  }
  func.func @transform_13(%arg0: i32, %arg1: i32) -> (i32, i32, i32) {
    %c0_i32 = arith.constant 0 : i32
    %c0_i32_0 = arith.constant 0 : i32
    %c0_i32_1 = arith.constant 0 : i32
    return %arg1, %c0_i32, %c0_i32_0 : i32, i32, i32
  }
  func.func @transform_14(%arg0: i32, %arg1: i32) -> (i32, i32, i32) {
    %c0_i32 = arith.constant 0 : i32
    %c0_i32_0 = arith.constant 0 : i32
    %c0_i32_1 = arith.constant 0 : i32
    return %arg0, %c0_i32, %c0_i32_0 : i32, i32, i32
  }
  func.func @transform_15(%arg0: i32, %arg1: i32) -> (i32, i32, i32, i32, i32) {
    %c0_i32 = arith.constant 0 : i32
    %c0_i32_0 = arith.constant 0 : i32
    %c0_i32_1 = arith.constant 0 : i32
    %c0_i32_2 = arith.constant 0 : i32
    return %arg0, %arg1, %c0_i32, %c0_i32_0, %c0_i32_1 : i32, i32, i32, i32, i32
  }
}

</mosaic_0001>

<bundles_post_ra>
// kernel: bert_encoder_forward.1
= control target key start
LH: loop header
LB: loop body
LE: loop exit
PB: predicated region body
PF: predicated region fallthrough
CT: control target
= control target key end

     0   :  { %s2749_s0 = inlined_call_operand.vmem [shape: f32[2,8,32], index: 0, kind: input, shape index: {}]   ;;  %s2750_s1 = inlined_call_operand.vmem [shape: f32[2,1,1,8], index: 1, kind: input, shape index: {}]   ;;  %s2751_s2 = inlined_call_operand.vmem [shape: bf16[2,32,96], index: 2, kind: input, shape index: {}]   ;;  %s2752_s3 = inlined_call_operand.vmem [shape: f32[2,1,96], index: 3, kind: input, shape index: {}]   ;;  %s2753_s4 = inlined_call_operand.vmem [shape: bf16[2,32,32], index: 4, kind: input, shape index: {}]   ;;  %s2754_s5 = inlined_call_operand.vmem [shape: f32[2,1,32], index: 5, kind: input, shape index: {}]   ;;  %s2755_s6 = inlined_call_operand.vmem [shape: f32[2,1,32], index: 6, kind: input, shape index: {}]   ;;  %s2756_s7 = inlined_call_operand.vmem [shape: f32[2,1,32], index: 7, kind: input, shape index: {}]   ;;  %s2757_s8 = inlined_call_operand.vmem [shape: bf16[2,32,128], index: 8, kind: input, shape index: {}]   ;;  %s2758_s9 = inlined_call_operand.vmem [shape: f32[2,1,128], index: 9, kind: input, shape index: {}]   ;;  %s2759_s10 = inlined_call_operand.vmem [shape: bf16[2,128,32], index: 10, kind: input, shape index: {}]   ;;  %s2760_s11 = inlined_call_operand.vmem [shape: f32[2,1,32], index: 11, kind: input, shape index: {}]   ;;  %s2761_s12 = inlined_call_operand.vmem [shape: f32[2,1,32], index: 12, kind: input, shape index: {}]   ;;  %s2762_s13 = inlined_call_operand.vmem [shape: f32[2,1,32], index: 13, kind: input, shape index: {}]   ;;  %s2763_s14 = inlined_call_operand.hbm [shape: f32[2,8,32], index: 14, kind: output, shape index: {0}]   ;;  %s2764_s15 = inlined_call_operand.vmem [shape: bf16[2,2,4,8,8], index: 15, kind: output, shape index: {1}]  }
   0x1   :  { %2781 = sst [smem:[#allocation20_spill]] %s2749_s0 }
   0x2   :  { %2782 = sst [smem:[#allocation21_spill]] %s2750_s1 }
   0x3   :  { %2783 = sst [smem:[#allocation22_spill]] %s2751_s2 }
   0x4   :  { %2784 = sst [smem:[#allocation23_spill]] %s2753_s4 }
   0x5   :  { %2785 = sst [smem:[#allocation24_spill]] %s2755_s6 }
   0x6   :  { %2786 = sst [smem:[#allocation25_spill]] %s2756_s7 }
   0x7   :  { %2787 = sst [smem:[#allocation26_spill]] %s2757_s8 }
   0x8   :  { %2788 = sst [smem:[#allocation27_spill]] %s2758_s9 }
   0x9   :  { %2789 = sst [smem:[#allocation28_spill]] %s2761_s12 }
   0xa   :  { %2790 = sst [smem:[#allocation29_spill]] %s2762_s13 }
   0xb   :  { %2791 = sst [smem:[#allocation30_spill]] %s2763_s14 }
   0xc   :  { %2792 = sst [smem:[#allocation31_spill]] %s2764_s15 }
   0xd   :  { %21 = vsyncpa [#allocation4], 0 }
   0xe   :  { %23 = vsyncpa [#allocation4 + $0x1], 0  ;;  %s2377_s18 = smov 0   ;;  %s2379_s19 = smov 0  }
   0xf   :  { %s2381_s20 = smov 0   ;;  %s2383_s21 = smov 0  }
  0x10   :  { %s2385_s22 = smov 0   ;;  %s2387_s23 = smov 0  }
  0x11   :  { %s2389_s24 = smov 0   ;;  %s2391_s25 = smov 0  }
  0x12 LB: > { %2793 = sst [smem:[#allocation6_spill]] %s2250_s18  ;;  %s1870_s26 = sadd.s32 4294967295, %s2278_s25   ;;  %s2278_s25 = sphi %s2391_s25, %s29_s25   ;;  %s2274_s24 = sphi %s2389_s24, %s2850_s24   ;;  %s2270_s23 = sphi %s2387_s23, %s2849_s23   ;;  %s2266_s22 = sphi %s2385_s22, %s2848_s22   ;;  %s2262_s21 = sphi %s2383_s21, %s2847_s21   ;;  %s2258_s20 = sphi %s2381_s20, %s2846_s20   ;;  %s2254_s19 = sphi %s2379_s19, %s2845_s19   ;;  %s2250_s18 = sphi %s2377_s18, %s2844_s18  }
  0x13   : > { %2794 = sst [smem:[#allocation7_spill]] %s2254_s19  ;;  %s1871_s27 = sadd.s32 4294967294, %s2278_s25  }
  0x14   : > { %2795 = sst [smem:[#allocation8_spill]] %s2258_s20  ;;  %s38_s28 = sadd.s32 1, %s2270_s23 }
  0x15   : > { %2796 = sst [smem:[#allocation9_spill]] %s2262_s21  ;;  %p39_p0 = scmp.ge.s32.totalorder %s38_s28, 2 }
  0x16   : > { %2797 = sst [smem:[#allocation10_spill]] %s2266_s22  ;;  %s41_s29 = sadd.s32 1, %s2274_s24 }
  0x17   : > { %2798 = sst [smem:[#allocation11_spill]] %s2270_s23  ;;  %p422_p1 = scmp.ne.s32.totalorder %s2258_s20, %s2254_s19 }
  0x18   : > { %2799 = sst [smem:[#allocation12_spill]] %s2274_s24  ;;  %p423_p2 = scmp.eq.s32.totalorder %s1870_s26, 3 }
  0x19   : > { %2800 = sst [smem:[#allocation13_spill]] %s2278_s25  ;;  %s2852_s28 = smov (%p39_p0, %s38_s28), 0 }
  0x1a   : > { %2801 = sst [smem:[#allocation14_spill]] %s2852_s28  ;;  %s2854_s29 = smov (!%p39_p0, %s41_s29), %s2274_s24 }
  0x1b   : > { %p2426_p3 = por %p423_p2, %p422_p1  ;;  %p428_p4 = scmp.ne.s32.totalorder %s2254_s19, %s2250_s18 }
  0x1c   : > { %p43_p5 = scmp.ge.s32.totalorder %s2854_s29, 2  ;;  %p429_p6 = scmp.eq.s32.totalorder %s1871_s27, 3 }
  0x1d   : > { %s2802_s30 = scalar_select %p2426_p3, 1, 0 }
  0x1e   : > { %p1874_p7 = scmp.ge.s32.totalorder %s2278_s25, 1  ;;  %p568_p8 = scmp.lt.s32.totalorder %s2278_s25, 5 }
  0x1f   : > { %2803 = sst [smem:[#allocation15_spill]] %s2802_s30  ;;  %s2856_s29 = smov (%p43_p5, %s2854_s29), 0 }
  0x20   : > { %2804 = sst [smem:[#allocation16_spill]] %s2856_s29  ;;  %p2436_p9 = por %p429_p6, %p428_p4 }
  0x21   : > { %p569_p10 = pnand %p1874_p7, %p568_p8  ;;  %s409_s17 = ssub.s32 %s2274_s24, %s2856_s29 }
  0x22   : > { %s2805_s16 = scalar_select %p2436_p9, 1, 0 }
  0x23   : > { %s412_s26 = sadd.s32 1, %s2258_s20  ;;  %p410_p11 = scmp.eq.s32.totalorder %s409_s17, 0 }
  0x24   : > { %2806 = sst [smem:[#allocation17_spill]] %s2805_s16  ;;  %572 = sbr.rel (%p569_p10) target bundleno = 2663 (0xa67), region = 76 }
  0x25   : > { %s2444_s28 = scalar_select %p410_p11, %s2258_s20, %s412_s26  }
  0x27   : > { %2807 = sst [smem:[#allocation18_spill]] %s2444_s28 }
  0x2b   : > { %s2768_s27 = sand.u32 1, %s2254_s19   ;;  %p671_p12 = scmp.lt.s32.totalorder %s2266_s22, 1 }
  0x2c   : > { %s2450_s23 = sshll.u32 %s2768_s27, 3  ;;  %p678_p13 = scmp.lt.s32.totalorder %s2262_s21, 1 }
  0x2d   : > { %s2454_s16 = scalar_select %p671_p12, %s2266_s22, 1 }
  0x2e   : > { %s2457_s17 = scalar_select %p678_p13, %s2262_s21, 1 }
  0x2f   : > { %s1876_s26 = sshll.u32 %s2454_s16, 3  ;;  %s2809_s0 = sld [smem:[#allocation20_spill]] }
  0x30   : > { %s1931_s25 = sshll.u32 %s2457_s17, 4  ;;  %s2810_s2 = sld [smem:[#allocation22_spill]] }
  0x31   : > { %s2811_s4 = sld [smem:[#allocation23_spill]]  ;;  %s2815_s8 = sld [smem:[#allocation26_spill]] }
  0x32   : > { %s1885_s12 = sshll.u32 %s2457_s17, 2  ;;  %s2819_s24 = sld [smem:[#allocation31_spill]] }
  0x33   : > { %s728_s13 = sadd.s32 %s1885_s12, %s1876_s26  ;;  %s659_s20 = scalar_lea.vmem [#allocation3], %s2450_s23 }
  0x35   : > { %s674_s18 = scalar_lea.vmem %s2809_s0, %s1876_s26  ;;  %s2820_s0 = sld [smem:[#allocation9_spill]] }
  0x36   : > { %s682_s19 = scalar_lea.vmem %s2810_s2, %s1931_s25  ;;  %s2817_s2 = sld [smem:[#allocation28_spill]] }
  0x37   : > { %s2478_s29 = scalar_lea.vmem %s2811_s4, %s1931_s25  ;;  %s2495_s15 = scalar_lea.vmem %s2815_s8, %s1931_s25 }
  0x38   : > { %2812 = sst [smem:[#allocation19_spill]] %s2478_s29  ;;  %s1934_s29 = sshll.u32 %s2457_s17, 6 }
  0x39   : > { %s2509_s1 = scalar_lea.vmem %s2759_s10, %s1934_s29  ;;  %s2818_s8 = sld [smem:[#allocation29_spill]] }
  0x3a   : > { %s1887_s4 = sshll.u32 %s728_s13, 2 }
  0x3b   : > { %s2523_s27 = scalar_lea.vmem %s2819_s24, %s1887_s4  ;;  %p1888_p0 = scmp.ne.s32.totalorder %s2820_s0, 0 }
  0x3c   : > { %s718_s21 = scalar_lea.vmem %s2817_s2, %s2457_s17  ;;  %v736_v0 = vld [vmem:[%s674_s18] sm:$0xff] (!%p1888_p0)  ;;  %vm737_vm0 = vcmask (!%p1888_p0), 261120  }
  0x3d   : > { %735 = sbr.rel (%p1888_p0) target bundleno = 68 (0x44), region = 80  ;;  %738 = vst.msk [vmem:[#allocation2] sm:$0xff] (!%p1888_p0), %vm737_vm0, %v736_v0 }
  0x3f   : > { %s721_s7 = scalar_lea.vmem %s2818_s8, %s2457_s17 }
  0x44 PF: > { %v2148_v1 = vld [vmem:[%s682_s19] sm:$0xff]   ;;  %v2280_v2 = vmov 0.0   ;;  %v2149_v3 = vld [vmem:[%s682_s19 + $0x8] sm:$0xff]   ;;  %vm2281_vm1 = vmmov 0   ;;  %vm765_vm2 = vcmask 261120   ;;  %s2821_s6 = scalar_lea.vmem %s2752_s3, %s2457_s17  ;;  %s2282_s8 = smov 120  }
  0x45   : > { %1969 = vmatprep.subr.bf16.mxu0 %v2280_v2  ;;  %1989 = vmatprep.subr.bf16.mxu1 %v2280_v2  ;;  %v2531_v4 = vld [vmem:[#allocation2] sm:$0xff]  ;;  %s2283_s9 = smov 96   ;;  %s2284_s18 = smov 80   ;;  %vm819_vm3 = vcmask 64512   ;;  %vm878_vm4 = vcmask 60416   ;;  %vm885_vm5 = vcmask 1043456  }
  0x46   : > { %1970 = vmatpush3.bf16.msra.mxu0 %v2148_v1  ;;  %1973 = vmatprep.mubr.msk.bf16.mxu0 %vm2281_vm1, %v2280_v2  ;;  %v741_v5 = vpack.c.bf16 %v2531_v4, %v2531_v4  ;;  %v1889_v6 = vld [vmem:[%s2821_s6] ss:$0 sm:$0xff]  ;;  %s2285_s19 = smov 88   ;;  %s2286_s26 = smov 72   ;;  %vm1278_vm6 = vcmask 130048   ;;  %vm1280_vm7 = vcmask 195584  }
  0x47   : > { %1971 = vmatprep.subr.bf16.mxu0 %v2280_v2  ;;  %1991 = vmatprep.mubr.msk.bf16.mxu1 %vm2281_vm1, %v2280_v2  ;;  %s2287_s29 = smov 112   ;;  %s2288_s28 = smov 104  }
  0x48   : > { %s2822_s25 = sld [smem:[#allocation21_spill]]  ;;  %s2290_s12 = smov 64  }
  0x49   : > { %s2291_s13 = smov 40   ;;  %s2292_s24 = smov 48  }
  0x4a   : > { %1972 = vmatpush3.bf16.msra.mxu0 %v2149_v3  ;;  %s2824_s0 = sld [smem:[#allocation19_spill]]  ;;  %s2293_s2 = smov 8  }
  0x4b   : > { %1977 = vmatprep.subr.bf16.mxu0 %v2280_v2  ;;  %s2295_s4 = smov 24   ;;  %s2828_s30 = sld [smem:[#allocation25_spill]] }
  0x4d   : > { %1974 = vmatmul.mubr.msk.bf16.vlgmr.msra.gmra.mrb[0].mxu0 %vm765_vm2, %v741_v5 }
  0x4e   : > { %1979 = vmatprep.mubr.msk.bf16.mxu0 %vm2281_vm1, %v2280_v2  ;;  %s2823_s22 = scalar_lea.vmem %s2822_s25, %s2454_s16  ;;  %s2289_s16 = smov 56  }
  0x4f   : > { %v1893_v24 = vld [vmem:[%s2823_s22] ss:$0 sm:$0xff] }
  0x51   : > { %s2829_s25 = scalar_lea.vmem %s2828_s30, %s2457_s17 }
 0x120   : > { %v803_v7 = vpop.f32.mrb[0].mxu0 }
 0x121   : > { %v804_v8 = vadd.f32 %v1889_v6, %v803_v7  ;;  %v1975_v9 = vpop.f32.mrb[1].mxu0 }
 0x122   : > { %v806_v10 = vpop.f32.mrb[2].mxu0 }
 0x123   : > { %v2547_v11 = vpack.c.bf16 %v804_v8, %v804_v8  ;;  %v1976_v12 = vpop.f32.mrb[3].mxu0 }
 0x125   : > { %929 = vrot.lane.b32.xlu1 %v2547_v11, %s2282_s8  ;;  %817 = vrot.lane.b32.xlu0 %v2547_v11, %s2283_s9  ;;  %s2825_s9 = scalar_lea.vmem %s2754_s5, %s2457_s17 }
 0x129   : > { %1043 = vrot.lane.b32.xlu1 %v2547_v11, %s2284_s18  ;;  %931 = vrot.lane.b32.xlu0 %v2547_v11, %s2285_s19 }
 0x12d   : > { %1155 = vrot.lane.b32.xlu1 %v2547_v11, %s2286_s26  ;;  %1041 = vrot.lane.b32.xlu0 %v2547_v11, %s2287_s29  ;;  %s2826_s26 = sld [smem:[#allocation24_spill]] }
 0x131   : > { %1153 = vrot.lane.b32.xlu0 %v2547_v11, %s2288_s28 }
 0x133   : > { %s2827_s29 = scalar_lea.vmem %s2826_s26, %s2457_s17 }
 0x197   : > { %v818_v13 = vpop.permute.xlu0 %817  ;;  %v930_v15 = vpop.permute.xlu1 %929 }
 0x198   : > { %v824_v14 = vsel %vm819_vm3, %v818_v13, 0 }
 0x199   : > { %1978 = vmatpush3.bf16.xpose.msra.mxu0 %v824_v14 }
 0x19a   : > { %1983 = vmatprep.subr.bf16.mxu0 %v2280_v2 }
 0x19b   : > { %v932_v16 = vpop.permute.xlu0 %931  ;;  %v1044_v18 = vpop.permute.xlu1 %1043 }
 0x19c   : > { %v937_v17 = vsel %vm819_vm3, %v932_v16, 0  ;;  %v1049_v19 = vsel %vm819_vm3, %v1044_v18, 0 }
 0x19d   : > { %1990 = vmatpush3.bf16.xpose.msra.mxu1 %v937_v17 }
 0x19e   : > { %2001 = vmatprep.subr.bf16.mxu1 %v2280_v2 }
 0x19f   : > { %v1156_v20 = vpop.permute.xlu1 %1155  ;;  %v1042_v21 = vpop.permute.xlu0 %1041 }
 0x1a0   : > { %1980 = vmatmul.mubr.msk.bf16.vlgmr.msra.gmra.mrb[4].mxu0 %vm819_vm3, %v2547_v11  ;;  %v1161_v22 = vsel %vm819_vm3, %v1156_v20, 0 }
 0x1a1   : > { %1985 = vmatprep.mubr.msk.bf16.mxu0 %vm2281_vm1, %v2280_v2 }
 0x1a3   : > { %v1154_v23 = vpop.permute.xlu0 %1153 }
 0x1a4   : > { %1992 = vmatmul.mubr.msk.bf16.vlgmr.msra.gmra.mrb[0].mxu1 %vm819_vm3, %v930_v15 }
 0x1a5   : > { %2002 = vmatpush3.bf16.xpose.msra.mxu1 %v1049_v19  ;;  %2003 = vmatprep.mubr.msk.bf16.mxu1 %vm2281_vm1, %v2280_v2 }
 0x1a6   : > { %2013 = vmatprep.subr.bf16.mxu1 %v2280_v2 }
 0x1ac   : > { %2004 = vmatmul.mubr.msk.bf16.vlgmr.msra.gmra.mrb[4].mxu1 %vm819_vm3, %v1042_v21 }
 0x1ad   : > { %2014 = vmatpush3.bf16.xpose.msra.mxu1 %v1161_v22  ;;  %2015 = vmatprep.mubr.msk.bf16.mxu1 %vm2281_vm1, %v2280_v2 }
 0x1ae   : > { %2025 = vmatprep.subr.bf16.mxu1 %v2280_v2 }
 0x1b4   : > { %2016 = vmatmul.mubr.msk.bf16.vlgmr.msra.gmra.mrb[8].mxu1 %vm819_vm3, %v1154_v23 }
 0x1b5   : > { %2029 = vmatprep.mubr.msk.bf16.mxu1 %vm2281_vm1, %v2280_v2 }
 0x273   : > { %v860_v25 = vpop.f32.mrb[4].mxu0 }
 0x274   : > { %v861_v26 = vadd.f32 %v1893_v24, %v860_v25  ;;  %v1981_v27 = vpop.f32.mrb[5].mxu0 }
 0x275   : > { %v863_v28 = vpop.f32.mrb[6].mxu0 }
 0x276   : > { %v1982_v29 = vpop.f32.mrb[7].mxu0  ;;  %v866_v30 = vsel %vm819_vm3, %v861_v26, -inf }
 0x277   : > { %v973_v31 = vpop.f32.mrb[0].mxu1  ;;  %867 = vmax.xlane.f32.xlu1 %v866_v30 }
 0x278   : > { %v974_v32 = vadd.f32 %v1893_v24, %v973_v31  ;;  %v1993_v33 = vpop.f32.mrb[1].mxu1 }
 0x279   : > { %v976_v34 = vpop.f32.mrb[2].mxu1 }
 0x27a   : > { %v1994_v35 = vpop.f32.mrb[3].mxu1  ;;  %v979_v36 = vsel %vm819_vm3, %v974_v32, -inf }
 0x27b   : > { %980 = vmax.xlane.f32.xlu0 %v979_v36 }
 0x27f   : > { %v1085_v37 = vpop.f32.mrb[4].mxu1 }
 0x280   : > { %v1086_v38 = vadd.f32 %v1893_v24, %v1085_v37  ;;  %v2005_v39 = vpop.f32.mrb[5].mxu1 }
 0x281   : > { %v1088_v40 = vpop.f32.mrb[6].mxu1  ;;  %v2150_v39 = vld [vmem:[%s2824_s0] sm:$0xff]  }
 0x282   : > { %v2006_v41 = vpop.f32.mrb[7].mxu1  ;;  %v1091_v42 = vsel %vm819_vm3, %v1086_v38, -inf  ;;  %2026 = vmatpush3.bf16.msra.mxu1 %v2150_v39  ;;  %v2151_v40 = vld [vmem:[%s2824_s0 + $0x8] sm:$0xff]  }
 0x283   : > { %1092 = vmax.xlane.f32.xlu0 %v1091_v42  ;;  %2027 = vmatprep.subr.bf16.mxu1 %v2280_v2 }
 0x286   : > { %2028 = vmatpush3.bf16.msra.mxu1 %v2151_v40 }
 0x287   : > { %v1197_v43 = vpop.f32.mrb[8].mxu1  ;;  %2041 = vmatprep.subr.bf16.mxu1 %v2280_v2 }
 0x288   : > { %v1198_v44 = vadd.f32 %v1893_v24, %v1197_v43  ;;  %v2017_v45 = vpop.f32.mrb[9].mxu1 }
 0x289   : > { %v1200_v46 = vpop.f32.mrb[10].mxu1 }
 0x28a   : > { %v2018_v47 = vpop.f32.mrb[11].mxu1  ;;  %v1203_v48 = vsel %vm819_vm3, %v1198_v44, -inf }
 0x28b   : > { %1204 = vmax.xlane.f32.xlu1 %v1203_v48 }
 0x304   : > { %v868_v49 = vpop.xlane.xlu1 %867 }
 0x305   : > { %v869_v50 = vsub.f32 %v861_v26, %v868_v49 }
 0x307   : > { %v870_v51 = vmul.f32 1.442695, %v869_v50 }
 0x308   : > { %v981_v52 = vpop.xlane.xlu0 %980 }
 0x309   : > { %2162 = vpow2.f32 %v870_v51  ;;  %v982_v53 = vsub.f32 %v974_v32, %v981_v52 }
 0x30b   : > { %v983_v54 = vmul.f32 1.442695, %v982_v53 }
 0x30d   : > { %2164 = vpow2.f32 %v983_v54 }
 0x310   : > { %v1093_v55 = vpop.xlane.xlu0 %1092 }
 0x311   : > { %v1094_v56 = vsub.f32 %v1086_v38, %v1093_v55 }
 0x313   : > { %v2163_v57 = vpop.eup %2162  ;;  %v1095_v58 = vmul.f32 1.442695, %v1094_v56  ;;  %v1905_v56 = vld [vmem:[%s2825_s9] ss:$0 sm:$0xff]  ;;  %s2835_s9 = sld [smem:[#allocation9_spill]] }
 0x314   : > { %v872_v59 = vsel %vm819_vm3, %v2163_v57, 0.0 }
 0x315   : > { %2166 = vpow2.f32 %v1095_v58  ;;  %873 = vadd.xlane.f32.xlu0 %v872_v59 }
 0x317   : > { %v2165_v60 = vpop.eup %2164 }
 0x318   : > { %v985_v61 = vsel %vm819_vm3, %v2165_v60, 0.0  ;;  %v1205_v0 = vpop.xlane.xlu1 %1204 }
 0x319   : > { %986 = vadd.xlane.f32.xlu1 %v985_v61  ;;  %v1206_v1 = vsub.f32 %v1198_v44, %v1205_v0  ;;  %p1926_p1 = scmp.ne.s32.totalorder %s2835_s9, 1 }
 0x31b   : > { %v1207_v3 = vmul.f32 1.442695, %v1206_v1 }
 0x31d   : > { %2168 = vpow2.f32 %v1207_v3 }
 0x31f   : > { %v2167_v62 = vpop.eup %2166 }
 0x320   : > { %v1097_v63 = vsel %vm819_vm3, %v2167_v62, 0.0 }
 0x321   : > { %1098 = vadd.xlane.f32.xlu0 %v1097_v63 }
 0x327   : > { %v2169_v5 = vpop.eup %2168 }
 0x328   : > { %v1209_v6 = vsel %vm819_vm3, %v2169_v5, 0.0 }
 0x32a   : > { %993 = vrot.lane.b32.xlu1 %v2547_v11, %s2289_s16  ;;  %s2830_s16 = sld [smem:[#allocation27_spill]] }
 0x337   : > { %880 = vrot.lane.b32.xlu0 %v2547_v11, %s2290_s12  ;;  %s2831_s12 = scalar_lea.vmem %s2830_s16, %s2457_s17 }
 0x33b   : > { %1217 = vrot.lane.b32.xlu0 %v2547_v11, %s2291_s13 }
 0x34e   : > { %1210 = vadd.xlane.f32.xlu1 %v1209_v6 }
 0x35f   : > { %1105 = vrot.lane.b32.xlu1 %v2547_v11, %s2292_s24  ;;  %s2832_s24 = scalar_lea.vmem %s2760_s11, %s2457_s17 }
 0x3a2   : > { %v874_v7 = vpop.xlane.xlu0 %873 }
 0x3a3   : > { %2170 = vrcp.f32 %v874_v7  ;;  %v2152_v7 = vld [vmem:[%s2495_s15] sm:$0xff]  }
 0x3a6   : > { %v987_v8 = vpop.xlane.xlu1 %986 }
 0x3a7   : > { %2172 = vrcp.f32 %v987_v8  ;;  %v2153_v8 = vld [vmem:[%s2495_s15 + $0x8] sm:$0xff]  }
 0x3aa   : > { %v994_v17 = vpop.permute.xlu1 %993 }
 0x3ab   : > { %v999_v19 = vsel %vm885_vm5, %v994_v17, 0 }
 0x3ad   : > { %v2171_v9 = vpop.eup %2170 }
 0x3ae   : > { %v876_v10 = vmul.f32 %v2171_v9, %v2163_v57  ;;  %v1099_v12 = vpop.xlane.xlu0 %1098 }
 0x3af   : > { %2174 = vrcp.f32 %v1099_v12 }
 0x3b0   : > { %v877_v13 = vpack.c.bf16 %v876_v10, %v876_v10 }
 0x3b1   : > { %v2173_v14 = vpop.eup %2172 }
 0x3b2   : > { %v989_v15 = vmul.f32 %v2173_v14, %v2165_v60  ;;  %v881_v16 = vpop.permute.xlu0 %880  ;;  %879 = vst.msk [vmem:[%s2523_s27] sm:$0xf] %vm878_vm4, %v877_v13 }
 0x3b3   : > { %v887_v11 = vsel %vm885_vm5, %v881_v16, 0 }
 0x3b4   : > { %1984 = vmatpush3.bf16.msra.mxu0 %v887_v11  ;;  %v990_v18 = vpack.c.bf16 %v989_v15, %v989_v15  ;;  %v1910_v15 = vld [vmem:[%s2829_s25] ss:$0 sm:$0xff] }
 0x3b5   : > { %1995 = vmatprep.subr.bf16.mxu0 %v2280_v2 }
 0x3b6   : > { %1897 = vst.msk [vmem:[%s2523_s27 + $0x4] sm:$0xf] %vm878_vm4, %v990_v18  ;;  %v1218_v26 = vpop.permute.xlu0 %1217 }
 0x3b7   : > { %1986 = vmatmul.mubr.msk.bf16.vlgmr.msra.gmra.mrb[8].mxu0 %vm819_vm3, %v877_v13  ;;  %v1223_v27 = vsel %vm885_vm5, %v1218_v26, 0  ;;  %v1909_v13 = vld [vmem:[%s2827_s29] ss:$0 sm:$0xff] }
 0x3b8   : > { %1996 = vmatpush3.bf16.msra.mxu0 %v999_v19  ;;  %1997 = vmatprep.mubr.msk.bf16.mxu0 %vm2281_vm1, %v2280_v2  ;;  %v2155_v19 = vld [vmem:[%s2509_s1 + $0x8] sm:$0xff]   ;;  %v1911_v26 = vld [vmem:[%s2831_s12] ss:$0 sm:$0xff] }
 0x3b9   : > { %v2175_v20 = vpop.eup %2174  ;;  %2007 = vmatprep.subr.bf16.mxu0 %v2280_v2 }
 0x3ba   : > { %v1101_v21 = vmul.f32 %v2175_v20, %v2167_v62  ;;  %v2156_v20 = vld [vmem:[%s2509_s1 + $0x10] sm:$0xff]  }
 0x3bc   : > { %v1102_v22 = vpack.c.bf16 %v1101_v21, %v1101_v21  ;;  %v2157_v21 = vld [vmem:[%s2509_s1 + $0x18] sm:$0xff]  }
 0x3be   : > { %1900 = vst.msk [vmem:[%s2523_s27 + $0x8] sm:$0xf] %vm878_vm4, %v1102_v22 }
 0x3bf   : > { %1998 = vmatmul.mubr.msk.bf16.vlgmr.msra.gmra.mrb[12].mxu0 %vm819_vm3, %v990_v18  ;;  %v2154_v18 = vld [vmem:[%s2509_s1] sm:$0xff]  }
 0x3c0   : > { %2009 = vmatprep.mubr.msk.bf16.mxu0 %vm2281_vm1, %v2280_v2 }
 0x3db   : > { %v1211_v23 = vpop.xlane.xlu1 %1210 }
 0x3dc   : > { %2176 = vrcp.f32 %v1211_v23  ;;  %v2159_v23 = vld [vmem:[%s2509_s1 + $0x28] sm:$0xff]  }
 0x3df   : > { %v1106_v24 = vpop.permute.xlu1 %1105 }
 0x3e0   : > { %v1111_v25 = vsel %vm885_vm5, %v1106_v24, 0  ;;  %v2160_v24 = vld [vmem:[%s2509_s1 + $0x30] sm:$0xff]  }
 0x3e1   : > { %2008 = vmatpush3.bf16.msra.mxu0 %v1111_v25  ;;  %v2161_v25 = vld [vmem:[%s2509_s1 + $0x38] sm:$0xff]  }
 0x3e2   : > { %2019 = vmatprep.subr.bf16.mxu0 %v2280_v2 }
 0x3e4   : > { %2010 = vmatmul.mubr.msk.bf16.vlgmr.msra.gmra.mrb[16].mxu0 %vm819_vm3, %v1102_v22  ;;  %v2158_v22 = vld [vmem:[%s2509_s1 + $0x20] sm:$0xff]  }
 0x3e5   : > { %2020 = vmatpush3.bf16.msra.mxu0 %v1223_v27  ;;  %2021 = vmatprep.mubr.msk.bf16.mxu0 %vm2281_vm1, %v2280_v2 }
 0x3e6   : > { %v2177_v28 = vpop.eup %2176  ;;  %2033 = vmatprep.subr.bf16.mxu0 %v2280_v2 }
 0x3e7   : > { %v1213_v29 = vmul.f32 %v2177_v28, %v2169_v5 }
 0x3e9   : > { %v1214_v30 = vpack.c.bf16 %v1213_v29, %v1213_v29 }
 0x3eb   : > { %1903 = vst.msk [vmem:[%s2523_s27 + $0xc] sm:$0xf] %vm878_vm4, %v1214_v30  ;;  %s2294_s27 = smov 16  }
 0x3ec   : > { %2022 = vmatmul.mubr.msk.bf16.vlgmr.msra.gmra.mrb[20].mxu0 %vm819_vm3, %v1214_v30 }
 0x3ed   : > { %2037 = vmatprep.mubr.msk.bf16.mxu0 %vm2281_vm1, %v2280_v2  ;;  %2034 = vmatpush3.bf16.msra.mxu0 %v2152_v7 }
 0x3ee   : > { %2035 = vmatprep.subr.bf16.mxu0 %v2280_v2 }
 0x3f1   : > { %2036 = vmatpush3.bf16.msra.mxu0 %v2153_v8 }
 0x48a   : > { %v923_v31 = vpop.f32.mrb[8].mxu0 }
 0x48b   : > { %v1987_v32 = vpop.f32.mrb[9].mxu0 }
 0x48c   : > { %v926_v33 = vpop.f32.mrb[10].mxu0 }
 0x48d   : > { %v1988_v34 = vpop.f32.mrb[11].mxu0 }
 0x492   : > { %v1035_v35 = vpop.f32.mrb[12].mxu0 }
 0x493   : > { %1266 = vrot.lane.b32.xlu1 %v1035_v35, %s2293_s2  ;;  %v1999_v36 = vpop.f32.mrb[13].mxu0 }
 0x494   : > { %v1038_v37 = vpop.f32.mrb[14].mxu0 }
 0x495   : > { %v2000_v38 = vpop.f32.mrb[15].mxu0 }
 0x4b7   : > { %v1147_v41 = vpop.f32.mrb[16].mxu0 }
 0x4b8   : > { %1270 = vrot.lane.b32.xlu0 %v1147_v41, %s2294_s27  ;;  %v2011_v42 = vpop.f32.mrb[17].mxu0  ;;  %v1915_v41 = vld [vmem:[%s2832_s24] ss:$0 sm:$0xff] }
 0x4b9   : > { %v1150_v43 = vpop.f32.mrb[18].mxu0 }
 0x4ba   : > { %v2012_v44 = vpop.f32.mrb[19].mxu0 }
 0x4bf   : > { %v1259_v45 = vpop.f32.mrb[20].mxu0 }
 0x4c0   : > { %1274 = vrot.lane.b32.xlu1 %v1259_v45, %s2295_s4  ;;  %v2023_v46 = vpop.f32.mrb[21].mxu0 }
 0x4c1   : > { %v1262_v47 = vpop.f32.mrb[22].mxu0 }
 0x4c2   : > { %v2024_v48 = vpop.f32.mrb[23].mxu0 }
 0x505   : > { %v1267_v49 = vpop.permute.xlu1 %1266 }
 0x506   : > { %v1277_v51 = vsel %vm819_vm3, %v923_v31, %v1267_v49 }
 0x52a   : > { %v1271_v50 = vpop.permute.xlu0 %1270 }
 0x52b   : > { %v1279_v52 = vsel %vm1278_vm6, %v1277_v51, %v1271_v50 }
 0x532   : > { %v1275_v53 = vpop.permute.xlu1 %1274 }
 0x533   : > { %v1281_v54 = vsel %vm1280_vm7, %v1279_v52, %v1275_v53 }
 0x534   : > { %v1282_v55 = vpack.c.bf16 %v1281_v54, %v1281_v54 }
 0x536   : > { %2030 = vmatmul.mubr.msk.bf16.vlgmr.msra.gmra.mrb[12].mxu1 %vm765_vm2, %v1282_v55 }
 0x537   : > { %2057 = vmatprep.mubr.msk.bf16.mxu1 %vm2281_vm1, %v2280_v2  ;;  %2042 = vmatpush3.bf16.msra.mxu1 %v2154_v18 }
 0x538   : > { %2043 = vmatprep.subr.bf16.mxu1 %v2280_v2 }
 0x53b   : > { %2044 = vmatpush3.bf16.msra.mxu1 %v2155_v19 }
 0x53c   : > { %2045 = vmatprep.subr.bf16.mxu1 %v2280_v2 }
 0x53f   : > { %2046 = vmatpush3.bf16.msra.mxu1 %v2156_v20 }
 0x540   : > { %2047 = vmatprep.subr.bf16.mxu1 %v2280_v2 }
 0x543   : > { %2048 = vmatpush3.bf16.msra.mxu1 %v2157_v21 }
 0x544   : > { %2049 = vmatprep.subr.bf16.mxu1 %v2280_v2 }
 0x547   : > { %2050 = vmatpush3.bf16.msra.mxu1 %v2158_v22 }
 0x548   : > { %2051 = vmatprep.subr.bf16.mxu1 %v2280_v2 }
 0x54b   : > { %2052 = vmatpush3.bf16.msra.mxu1 %v2159_v23 }
 0x54c   : > { %2053 = vmatprep.subr.bf16.mxu1 %v2280_v2 }
 0x54f   : > { %2054 = vmatpush3.bf16.msra.mxu1 %v2160_v24 }
 0x550   : > { %2055 = vmatprep.subr.bf16.mxu1 %v2280_v2 }
 0x553   : > { %2056 = vmatpush3.bf16.msra.mxu1 %v2161_v25 }
 0x609   : > { %v1343_v57 = vpop.f32.mrb[12].mxu1 }
 0x60a   : > { %v1344_v58 = vadd.f32 %v1905_v56, %v1343_v57  ;;  %v2031_v59 = vpop.f32.mrb[13].mxu1 }
 0x60b   : > { %v1346_v60 = vpop.f32.mrb[14].mxu1 }
 0x60c   : > { %v2032_v61 = vpop.f32.mrb[15].mxu1  ;;  %v1349_v62 = vadd.f32 %v1344_v58, %v2531_v4  ;;  %v1924_v58 = vld [vmem:[%s718_s21] ss:$0 sm:$0xff] }
 0x60d   : > { %v1925_v60 = vld [vmem:[%s721_s7] ss:$0 sm:$0xff] }
 0x60e   : > { %v1352_v63 = vsel %vm765_vm2, %v1349_v62, 0.0 }
 0x60f   : > { %1353 = vadd.xlane.f32.xlu0 %v1352_v63 }
 0x69c   : > { %v1354_v0 = vpop.xlane.xlu0 %1353 }
 0x69d   : > { %v1356_v1 = vmul.f32 0.03125, %v1354_v0 }
 0x69f   : > { %v1357_v3 = vsub.f32 %v1349_v62, %v1356_v1 }
 0x6a1   : > { %v1358_v5 = vmul.f32 %v1357_v3, %v1357_v3 }
 0x6a3   : > { %v1359_v6 = vsel %vm765_vm2, %v1358_v5, 0.0 }
 0x6a4   : > { %1360 = vadd.xlane.f32.xlu1 %v1359_v6 }
 0x731   : > { %v1361_v4 = vpop.xlane.xlu1 %1360 }
 0x732   : > { %v1362_v9 = vmul.f32 0.03125, %v1361_v4 }
 0x734   : > { %v1363_v10 = vadd.f32 1e-12, %v1362_v9 }
 0x736   : > { %2178 = vrsqrt.f32 %v1363_v10 }
 0x740   : > { %v2179_v12 = vpop.eup %2178 }
 0x741   : > { %v1365_v14 = vmul.f32 %v2179_v12, %v1357_v3 }
 0x743   : > { %v1372_v16 = vmul.f32 %v1909_v13, %v1365_v14 }
 0x745   : > { %v1379_v11 = vadd.f32 %v1910_v15, %v1372_v16 }
 0x747   : > { %v1380_v17 = vpack.c.bf16 %v1379_v11, %v1379_v11 }
 0x749   : > { %2038 = vmatmul.mubr.msk.bf16.vlgmr.msra.gmra.mrb[24].mxu0 %vm765_vm2, %v1380_v17 }
 0x81c   : > { %v1441_v27 = vpop.f32.mrb[24].mxu0 }
 0x81d   : > { %v1442_v28 = vadd.f32 %v1911_v26, %v1441_v27  ;;  %v2039_v29 = vpop.f32.mrb[25].mxu0 }
 0x81e   : > { %v1444_v30 = vpop.f32.mrb[26].mxu0 }
 0x81f   : > { %v1447_v31 = vmul.f32 %v1442_v28, %v1442_v28  ;;  %v2040_v32 = vpop.f32.mrb[27].mxu0 }
 0x821   : > { %v1448_v33 = vmul.f32 %v1447_v31, %v1442_v28 }
 0x823   : > { %v1449_v34 = vmul.f32 0.044715, %v1448_v33 }
 0x825   : > { %v1450_v35 = vadd.f32 %v1449_v34, %v1442_v28 }
 0x827   : > { %v1451_v36 = vmul.f32 0.7978846, %v1450_v35 }
 0x829   : > { %2180 = vtanh.f32 %v1451_v36 }
 0x833   : > { %v2181_v37 = vpop.eup %2180 }
 0x834   : > { %v1453_v2 = vadd.f32 1.0, %v2181_v37 }
 0x836   : > { %v1454_v38 = vmul.f32 0.5, %v1453_v2 }
 0x838   : > { %v1455_v39 = vmul.f32 %v1454_v38, %v1442_v28 }
 0x83a   : > { %v1456_v40 = vpack.c.bf16 %v1455_v39, %v1455_v39 }
 0x83c   : > { %2058 = vmatmul.mubr.bf16.vlgmr.msra.gmra.mrb[16].mxu1 %v1456_v40 }
 0x90f   : > { %v1562_v42 = vpop.f32.mrb[16].mxu1 }
 0x910   : > { %v1563_v43 = vadd.f32 %v1915_v41, %v1562_v42  ;;  %v2059_v44 = vpop.f32.mrb[17].mxu1 }
 0x911   : > { %v1565_v45 = vpop.f32.mrb[18].mxu1 }
 0x912   : > { %v2060_v46 = vpop.f32.mrb[19].mxu1  ;;  %v1568_v47 = vadd.f32 %v1563_v43, %v1379_v11 }
 0x914   : > { %v1571_v48 = vsel %vm765_vm2, %v1568_v47, 0.0 }
 0x915   : > { %1572 = vadd.xlane.f32.xlu0 %v1571_v48 }
 0x9a2   : > { %v1573_v49 = vpop.xlane.xlu0 %1572 }
 0x9a3   : > { %v1574_v50 = vmul.f32 0.03125, %v1573_v49 }
 0x9a5   : > { %v1575_v51 = vsub.f32 %v1568_v47, %v1574_v50 }
 0x9a7   : > { %v1576_v52 = vmul.f32 %v1575_v51, %v1575_v51 }
 0x9a9   : > { %v1577_v53 = vsel %vm765_vm2, %v1576_v52, 0.0 }
 0x9aa   : > { %1578 = vadd.xlane.f32.xlu0 %v1577_v53 }
 0xa37   : > { %v1579_v54 = vpop.xlane.xlu0 %1578 }
 0xa38   : > { %v1580_v55 = vmul.f32 0.03125, %v1579_v54 }
 0xa3a   : > { %v1581_v56 = vadd.f32 1e-12, %v1580_v55 }
 0xa3c   : > { %2182 = vrsqrt.f32 %v1581_v56 }
 0xa46   : > { %v2183_v57 = vpop.eup %2182 }
 0xa47   : > { %v1583_v59 = vmul.f32 %v2183_v57, %v1575_v51  ;;  %1602 = sbr.rel (%p1926_p1) target bundleno = 2638 (0xa4e), region = 84 }
 0xa49   : > { %v1590_v61 = vmul.f32 %v1924_v58, %v1583_v59 }
 0xa4b   : > { %v1597_v62 = vadd.f32 %v1925_v60, %v1590_v61 }
 0xa4d   : > { %1598 = vst.msk [vmem:[#allocation2] sm:$0xff] %vm765_vm2, %v1597_v62  ;;  %1603 = vst.msk [vmem:[%s659_s20] sm:$0xff] (!%p1926_p1), %vm765_vm2, %v1597_v62 }
 0xa4e PF: > { %s2836_s18 = sld [smem:[#allocation10_spill]]  ;;  %s2837_s21 = sld [smem:[#allocation7_spill]] }
 0xa4f   : > { %s2839_s7 = sld [smem:[#allocation30_spill]]  ;;  %s1627_s14 = sshll.u32 %s659_s20, 4  ;;  %s1628_s14 = int_to_ptr.vmem [resolvable:$true] %s1627_s14 }
 0xa50   : > { %s2184_s15 = scalar_lea.vmem %s1628_s14, 128  ;;  %s2296_s22 = smov [#allocation3]  }
 0xa51   : > { %p2185_p2 = scmp.ne.s32.totalorder %s1628_s14, %s2184_s15  ;;  %s2188_s16 = sshll.u32 %s2296_s22, 4  ;;  %s2189_s16 = int_to_ptr.vmem [resolvable:$false] %s2188_s16 }
 0xa52   : > { %s2190_s12 = scalar_lea.vmem %s2189_s16, 256  ;;  %p2191_p6 = scmp.lt.s32.totalorder %s1628_s14, %s2189_s16 }
 0xa53   : > { %p2186_p4 = pnand %p2185_p2, %p2426_p3  ;;  %p2192_p7 = scmp.lt.s32.totalorder %s2190_s12, %s2184_s15 }
 0xa54   : > { %s1928_s26 = sshll.u32 %s2836_s18, 7  ;;  %s2840_s30 = sand.u32 1, %s2837_s21  }
 0xa55   : > { %s2698_s28 = scalar_lea.hbm %s2839_s7, %s1928_s26  ;;  %s1605_s25 = scalar_lea.sflag [#allocation4], %s2840_s30 }
 0xa56   : > { %p2187_p5 = pneg %p2186_p4  ;;  %p2193_p8 = por %p2192_p7, %p2191_p6 }
 0xa58   : > { %p2194_p10 = pnand %p2193_p8, %p2187_p5 }
 0xa5a   : > { %2197 = shalt.err (!%p2194_p10)
}
 0xa5b   : > { %s2198_s23 = scalar_lea.hbm %s2698_s28, 128  ;;  %s2202_s13 = scalar_lea.hbm %s2839_s7, 256 }
 0xa5c   : > { %p2199_p11 = scmp.ne.s32.totalorder %s2698_s28, %s2198_s23  ;;  %p2203_p0 = scmp.lt.u32.totalorder %s2698_s28, %s2839_s7 }
 0xa5d   : > { %p2204_p1 = scmp.lt.u32.totalorder %s2202_s13, %s2198_s23  ;;  %p2206_p4 = scmp.lt.u32.totalorder %s2198_s23, %s2698_s28 }
 0xa5e   : > { %p2200_p12 = pnand %p2199_p11, %p2426_p3 }
 0xa5f   : > { %p2205_p2 = por %p2204_p1, %p2203_p0 }
 0xa60   : > { %p2201_p13 = pneg %p2200_p12 }
 0xa61   : > { %p2207_p5 = por %p2206_p4, %p2205_p2 }
 0xa63   : > { %p2208_p6 = pnand %p2207_p5, %p2201_p13 }
 0xa65   : > { %2211 = shalt.err (!%p2208_p6)
}
 0xa66   : > { %2061 = dma.vmem_to_hbm [thread:$0]  (%p2426_p3), %s1628_s14, 128, %s2698_s28, %s1605_s25  }
 0xa67 PF: > { %s2841_s2 = sld [smem:[#allocation13_spill]]  ;;  %s2842_s27 = sld [smem:[#allocation6_spill]] }
 0xa6d   : > { %p2067_p7 = scmp.ge.s32.totalorder %s2841_s2, 2  ;;  %s1642_s6 = sand.u32 1, %s2842_s27  }
 0xa6e   : > { %s1643_s8 = scalar_lea.sflag [#allocation4], %s1642_s6 }
 0xa6f   : > { %p2064_p8 = pnand %p2067_p7, %p2436_p9 }
 0xa71   : > { %2245 = dma.done.wait (!%p2064_p8), %s1643_s8, 128  }
 0xa72   : > { %2247 = vsyncadd (!%p2064_p8), %s1643_s8, 4294967168  ;;  %s29_s25 = sadd.s32 1, %s2841_s2   ;;  %s2844_s18 = sld [smem:[#allocation7_spill]] }
 0xa73   : > { %p26_p10 = scmp.ge.s32.totalorder %s29_s25, 6   ;;  %s2845_s19 = sld [smem:[#allocation8_spill]] }
 0xa74   : > { %s2846_s20 = sld [smem:[#allocation18_spill]]  ;;  %s2847_s21 = sld [smem:[#allocation11_spill]] }
 0xa75   : > { %s2848_s22 = sld [smem:[#allocation12_spill]]  ;;  %s2849_s23 = sld [smem:[#allocation14_spill]] }
 0xa76   : > { %s2850_s24 = sld [smem:[#allocation16_spill]]  ;;  %28 = sbr.rel (!%p26_p10) target bundleno = 18 (0x12), region = 173 }
 0xa7d   :  { %1660 = vsyncpa [#allocation4], 1 }
 0xa7e   :  { %1662 = vsyncpa [#allocation4 + $0x1], 1 }

</bundles_post_ra>
